<compile_context>
chip_gen: v5e
topology: v5e:2x2
jax: 0.10.0
libtpu: 0.0.40
codegen_flags: <defaults>
</compile_context>

<pallas_src>
import functools

import numpy as np
import jax
import jax.numpy as jnp
from jax.experimental import pallas as pl
from jax.experimental.pallas import tpu as pltpu

_LANE = 128
_SUBLANE = 8
_FAST_PATH_ROWS = 4096          # fused single-kernel path when x fits a (4096,128) f32 block (2 MiB)
_MAX_REDUCE_ROWS = 4096         # pass-1 tile (~2 MiB); pass-2 uses 2x this (~4 MiB)
_REDUCE_PARTS = 2               # megacore split of pass 1 (v7x); harmless serial split on 1-TC chips
_VMEM_LIMIT = 32 * 1024 * 1024  # explicit scoped-VMEM limit, safe on v5e/v6e/v7x
_EPS = 1e-12                    # guards 0/0 for an all-zero input; preserves "first candidate wins"


def _round_up(a, b):
    return -(-a // b) * b


def _quant_consts(bits):
    qrange = float(1 << (bits - 1))
    min_val = float(-(1 << (bits - 1)))
    max_val = float((1 << (bits - 1)) - 1)
    scales = [float(2.0 ** i) / qrange for i in range(bits)]        # exact powers of two
    inv_scales = [qrange / float(2.0 ** i) for i in range(bits)]    # exact powers of two
    return min_val, max_val, scales, inv_scales


# --------------------------------------------------------------------------------------
# Fast path: whole tensor resident in VMEM, one kernel does search + argmax + apply.
# --------------------------------------------------------------------------------------
def _make_fused_kernel(bits):
    min_val, max_val, scales, inv_scales = _quant_consts(bits)

    def kernel(x_ref, o_ref):
        x = x_ref[...].astype(jnp.float32)
        best_metric = jnp.float32(-1.0)
        best_scale = jnp.float32(scales[0])
        best_inv = jnp.float32(inv_scales[0])
        for i in range(bits):
            # q is integer-valued; argmax(cos_i) == argmax(dot(x,q_i)/||q_i||): s_i, ||x|| cancel.
            q = jnp.clip(jnp.round(x * inv_scales[i]), min_val, max_val)
            dot_i = jnp.sum(jnp.sum(x * q, axis=0, keepdims=True))
            qq_i = jnp.sum(jnp.sum(q * q, axis=0, keepdims=True))
            metric = dot_i / jnp.maximum(jnp.sqrt(qq_i), _EPS)
            better = metric > best_metric                       # strict '>' => first max wins
            best_metric = jnp.where(better, metric, best_metric)
            best_scale = jnp.where(better, jnp.float32(scales[i]), best_scale)
            best_inv = jnp.where(better, jnp.float32(inv_scales[i]), best_inv)
        q = jnp.clip(jnp.round(x * best_inv), min_val, max_val)
        o_ref[...] = (q * best_scale).astype(o_ref.dtype)

    return kernel


# --------------------------------------------------------------------------------------
# Two-pass path, pass 1: tiled reduction, accumulating into part-indexed output blocks.
# --------------------------------------------------------------------------------------
def _make_reduce_kernel(bits):
    min_val, max_val, _, inv_scales = _quant_consts(bits)

    def kernel(x_ref, dot_ref, qq_ref):
        s = pl.program_id(1)

        @pl.when(s == 0)
        def _init():
            dot_ref[...] = jnp.zeros_like(dot_ref)
            qq_ref[...] = jnp.zeros_like(qq_ref)

        x = x_ref[...].astype(jnp.float32)
        # Hot loop: per-candidate lane-shaped partial sums (cross-lane reduce deferred to JAX).
        for i in range(bits):
            q = jnp.clip(jnp.round(x * inv_scales[i]), min_val, max_val)  # integer-valued
            dot_ref[i] += jnp.sum(x * q, axis=0, keepdims=True)
            qq_ref[i] += jnp.sum(q * q, axis=0, keepdims=True)

    return kernel


# --------------------------------------------------------------------------------------
# Two-pass path, pass 2: apply quantize/round/clamp/dequantize with the best scale.
# --------------------------------------------------------------------------------------
def _make_apply_kernel(bits):
    min_val, max_val, _, _ = _quant_consts(bits)

    def kernel(scales_ref, x_ref, o_ref):
        sc = scales_ref[...]                 # (2, 128): row 0 = scale, row 1 = 1/scale
        s = sc[0:1, :]
        inv = sc[1:2, :]
        x = x_ref[...].astype(jnp.float32)
        q = jnp.clip(jnp.round(x * inv), min_val, max_val)
        o_ref[...] = (q * s).astype(o_ref.dtype)

    return kernel


@functools.partial(jax.jit, static_argnames=("bits", "fast_path_rows", "max_reduce_rows"))
def quantizer_forward(x, bits, fast_path_rows=_FAST_PATH_ROWS, max_reduce_rows=_MAX_REDUCE_ROWS):
    """Pallas-backed equivalent of Quantizer(bits, out_channels).forward(x) (training mode)."""
    if bits == 32:
        return x
    assert bits != 1, "! Binary quantization is not supported !"
    # TODO(synk): the persistent `scale_list` voting across multiple forward calls is
    # Python-side module state; a single forward of a fresh module is modeled here.

    orig_shape = x.shape
    orig_dtype = x.dtype
    flat = x.reshape(-1)
    n = flat.shape[0]
    rows_min = -(-n // _LANE)

    min_val, max_val, scales, inv_scales = _quant_consts(bits)
    del min_val, max_val  # only needed inside kernels

    # ---------------- fast path: single fused kernel, x resident in VMEM ----------------
    if rows_min <= fast_path_rows:
        rows = max(_round_up(rows_min, _SUBLANE), _SUBLANE)
        pad = rows * _LANE - n
        if pad:
            flat = jnp.pad(flat, (0, pad))    # zeros are exact no-ops for dot and q^2
        x2d = flat.reshape(rows, _LANE)

        out2d = pl.pallas_call(
            _make_fused_kernel(bits),
            out_shape=jax.ShapeDtypeStruct((rows, _LANE), orig_dtype),
            grid=(1,),
            in_specs=[pl.BlockSpec((rows, _LANE), lambda i: (0, 0))],
            out_specs=pl.BlockSpec((rows, _LANE), lambda i: (0, 0)),
            compiler_params=pltpu.CompilerParams(vmem_limit_bytes=_VMEM_LIMIT),
        )(x2d)

        out = out2d.reshape(-1)
        if pad:
            out = out[:n]
        return out.reshape(orig_shape)

    # ---------------- two-pass path for large tensors ----------------
    parts = _REDUCE_PARTS
    t_target = -(-rows_min // max_reduce_rows)
    steps = max(1, -(-t_target // parts))
    tiles = parts * steps                              # even (parts == 2)
    tile_rows = _round_up(-(-rows_min // tiles), _SUBLANE)
    rows = tiles * tile_rows                           # padding bounded by ~8 rows per tile
    pad = rows * _LANE - n
    if pad:
        flat = jnp.pad(flat, (0, pad))                 # zero rows: exact no-ops for the metric
    x2d = flat.reshape(rows, _LANE)

    # Pass 1: (parallel parts, arbitrary steps) reduction -> per-part lane partials.
    dot_part, qq_part = pl.pallas_call(
        _make_reduce_kernel(bits),
        out_shape=(jax.ShapeDtypeStruct((parts * bits, 1, _LANE), jnp.float32),
                   jax.ShapeDtypeStruct((parts * bits, 1, _LANE), jnp.float32)),
        grid=(parts, steps),
        in_specs=[pl.BlockSpec((tile_rows, _LANE), lambda p, s: (p * steps + s, 0))],
        out_specs=(pl.BlockSpec((bits, 1, _LANE), lambda p, s: (p, 0, 0)),
                   pl.BlockSpec((bits, 1, _LANE), lambda p, s: (p, 0, 0))),
        compiler_params=pltpu.CompilerParams(
            dimension_semantics=("parallel", "arbitrary"),
            vmem_limit_bytes=_VMEM_LIMIT),
    )(x2d)

    # Tiny cross-part / cross-lane combine + argmax in plain JAX (parts*bits*128 elements).
    dot = jnp.sum(dot_part.reshape(parts, bits, _LANE), axis=(0, 2))   # (bits,)
    qq = jnp.sum(qq_part.reshape(parts, bits, _LANE), axis=(0, 2))
    metric = dot / jnp.maximum(jnp.sqrt(qq), _EPS)
    best = jnp.argmax(metric)                     # first max == strict '>' winner
    scale_vec = jnp.asarray(scales, dtype=jnp.float32)
    inv_vec = jnp.asarray(inv_scales, dtype=jnp.float32)
    best_scale = scale_vec[best]
    best_inv = inv_vec[best]
    scales_arr = jnp.stack([jnp.full((_LANE,), best_scale, dtype=jnp.float32),
                            jnp.full((_LANE,), best_inv, dtype=jnp.float32)])   # (2, 128)

    # Pass 2: apply with ~4 MiB blocks (2x the reduce tile), fully parallel.
    apply_rows = 2 * tile_rows
    grid_a = rows // apply_rows
    out2d = pl.pallas_call(
        _make_apply_kernel(bits),
        out_shape=jax.ShapeDtypeStruct((rows, _LANE), orig_dtype),
        grid=(grid_a,),
        in_specs=[pl.BlockSpec((2, _LANE), lambda r: (0, 0)),
                  pl.BlockSpec((apply_rows, _LANE), lambda r: (r, 0))],
        out_specs=pl.BlockSpec((apply_rows, _LANE), lambda r: (r, 0)),
        compiler_params=pltpu.CompilerParams(
            dimension_semantics=("parallel",),
            vmem_limit_bytes=_VMEM_LIMIT),
    )(scales_arr, x2d)

    out = out2d.reshape(-1)
    if pad:
        out = out[:n]
    return out.reshape(orig_shape)


def _reference_forward(x_np: np.ndarray, bits: int) -> np.ndarray:
    """Pure-NumPy reference mirroring the PyTorch training-mode forward."""
    qrange = float(1 << (bits - 1))
    min_val = float(-(1 << (bits - 1)))
    max_val = float((1 << (bits - 1)) - 1)
    xf = x_np.astype(np.float32).reshape(-1)

    def qdq(scale):
        q = np.clip(np.round(xf / scale), min_val, max_val)
        return q * scale

    best_metric, best_step = -1.0, 0
    for i in range(bits):
        scale_i = (2.0 ** i) / qrange
        out_i = qdq(scale_i)
        cos = float(np.dot(xf, out_i) /
                    max(np.linalg.norm(xf) * np.linalg.norm(out_i), 1e-8))
        if cos > best_metric:
            best_metric, best_step = cos, i
    final_scale = (2.0 ** best_step) / qrange
    return qdq(final_scale).reshape(x_np.shape)


if __name__ == "__main__":
    key = jax.random.PRNGKey(0)
    k1, k2 = jax.random.split(key)

    # Test 1: Quantizer(bits=8, out_channels=4) on a small NCHW conv activation (fast path).
    x1 = jax.random.normal(k1, (2, 4, 16, 16), dtype=jnp.float32)
    out1 = jax.block_until_ready(quantizer_forward(x1, 8))
    ref1 = _reference_forward(np.asarray(x1), 8)
    np.testing.assert_allclose(np.asarray(out1), ref1, rtol=1e-6, atol=1e-6)

    # Test 2: non-aligned activation exercising the wrapper pad path (fast path, bits=4).
    x2 = jax.random.normal(k2, (2, 16, 72, 71), dtype=jnp.float32)
    out2 = jax.block_until_ready(quantizer_forward(x2, 4))
    ref2 = _reference_forward(np.asarray(x2), 4)
    np.testing.assert_allclose(np.asarray(out2), ref2, rtol=1e-6, atol=1e-6)

    # Test 3: force the large-tensor two-pass path (megacore-split reduction grid,
    # multi-step accumulation, row padding, grouped apply tiles) on a small input
    # by shrinking the static thresholds.
    out3 = jax.block_until_ready(
        quantizer_forward(x2, 6, fast_path_rows=0, max_reduce_rows=512))
    ref3 = _reference_forward(np.asarray(x2), 6)
    np.testing.assert_allclose(np.asarray(out3), ref3, rtol=1e-6, atol=1e-6)

    print("KERNEL_OK")
</pallas_src>

<mosaic_0001>
module attributes {stable_mosaic.version = 11 : i64} {
  func.func @kernel(%arg0: i32, %arg1: memref<16x128xf32, #tpu.memory_space<vmem>>, %arg2: memref<16x128xf32, #tpu.memory_space<vmem>>) attributes {dimension_semantics = [#tpu.dimension_semantics<arbitrary>], iteration_bounds = array<i64: 1>, scalar_prefetch = 0 : i64, scratch_operands = 0 : i64, tpu.core_type = #tpu.core_type<tc>, window_params = [{pipeline_mode = #tpu.pipeline_mode<synchronous>, transform_indices = @transform_0, window_bounds = array<i64: 16, 128>}, {pipeline_mode = #tpu.pipeline_mode<synchronous>, transform_indices = @transform_1, window_bounds = array<i64: 16, 128>}]} {
    %c0 = arith.constant 0 : index
    %c0_0 = arith.constant 0 : index
    %0 = vector.load %arg1[%c0, %c0_0] : memref<16x128xf32, #tpu.memory_space<vmem>>, vector<16x128xf32>
    %cst = arith.constant 1.280000e+02 : f32
    %1 = vector.broadcast %cst : f32 to vector<16x128xf32>
    %2 = arith.mulf %0, %1 : vector<16x128xf32>
    %3 = math.roundeven %2 : vector<16x128xf32>
    %cst_1 = arith.constant -1.280000e+02 : f32
    %cst_2 = arith.constant 1.270000e+02 : f32
    %4 = vector.broadcast %cst_1 : f32 to vector<16x128xf32>
    %5 = arith.maximumf %4, %3 : vector<16x128xf32>
    %6 = vector.broadcast %cst_2 : f32 to vector<16x128xf32>
    %7 = arith.minimumf %6, %5 : vector<16x128xf32>
    %8 = arith.mulf %0, %7 : vector<16x128xf32>
    %cst_3 = arith.constant dense<0.000000e+00> : vector<128xf32>
    %9 = vector.multi_reduction <add>, %8, %cst_3 [0] : vector<16x128xf32> to vector<128xf32>
    %10 = vector.shape_cast %9 : vector<128xf32> to vector<1x128xf32>
    %11 = vector.shape_cast %10 : vector<1x128xf32> to vector<1x1x128xf32>
    %cst_4 = arith.constant dense<0.000000e+00> : vector<1xf32>
    %12 = vector.multi_reduction <add>, %11, %cst_4 [1, 2] : vector<1x1x128xf32> to vector<1xf32>
    %13 = vector.shape_cast %12 : vector<1xf32> to vector<1x1x1xf32>
    %14 = vector.extract %13[0, 0, 0] : f32 from vector<1x1x1xf32>
    %15 = arith.mulf %7, %7 : vector<16x128xf32>
    %cst_5 = arith.constant dense<0.000000e+00> : vector<128xf32>
    %16 = vector.multi_reduction <add>, %15, %cst_5 [0] : vector<16x128xf32> to vector<128xf32>
    %17 = vector.shape_cast %16 : vector<128xf32> to vector<1x128xf32>
    %18 = vector.shape_cast %17 : vector<1x128xf32> to vector<1x1x128xf32>
    %cst_6 = arith.constant dense<0.000000e+00> : vector<1xf32>
    %19 = vector.multi_reduction <add>, %18, %cst_6 [1, 2] : vector<1x1x128xf32> to vector<1xf32>
    %20 = vector.shape_cast %19 : vector<1xf32> to vector<1x1x1xf32>
    %21 = vector.extract %20[0, 0, 0] : f32 from vector<1x1x1xf32>
    %22 = math.sqrt %21 : f32
    %cst_7 = arith.constant 9.99999996E-13 : f32
    %23 = arith.maximumf %22, %cst_7 : f32
    %24 = arith.divf %14, %23 : f32
    %cst_8 = arith.constant -1.000000e+00 : f32
    %25 = arith.cmpf ogt, %24, %cst_8 : f32
    %cst_9 = arith.constant -1.000000e+00 : f32
    %26 = arith.select %25, %24, %cst_9 : f32
    %cst_10 = arith.constant 7.812500e-03 : f32
    %cst_11 = arith.constant 7.812500e-03 : f32
    %27 = arith.select %25, %cst_10, %cst_11 : f32
    %cst_12 = arith.constant 1.280000e+02 : f32
    %cst_13 = arith.constant 1.280000e+02 : f32
    %28 = arith.select %25, %cst_12, %cst_13 : f32
    %cst_14 = arith.constant 6.400000e+01 : f32
    %29 = vector.broadcast %cst_14 : f32 to vector<16x128xf32>
    %30 = arith.mulf %0, %29 : vector<16x128xf32>
    %31 = math.roundeven %30 : vector<16x128xf32>
    %cst_15 = arith.constant -1.280000e+02 : f32
    %cst_16 = arith.constant 1.270000e+02 : f32
    %32 = vector.broadcast %cst_15 : f32 to vector<16x128xf32>
    %33 = arith.maximumf %32, %31 : vector<16x128xf32>
    %34 = vector.broadcast %cst_16 : f32 to vector<16x128xf32>
    %35 = arith.minimumf %34, %33 : vector<16x128xf32>
    %36 = arith.mulf %0, %35 : vector<16x128xf32>
    %cst_17 = arith.constant dense<0.000000e+00> : vector<128xf32>
    %37 = vector.multi_reduction <add>, %36, %cst_17 [0] : vector<16x128xf32> to vector<128xf32>
    %38 = vector.shape_cast %37 : vector<128xf32> to vector<1x128xf32>
    %39 = vector.shape_cast %38 : vector<1x128xf32> to vector<1x1x128xf32>
    %cst_18 = arith.constant dense<0.000000e+00> : vector<1xf32>
    %40 = vector.multi_reduction <add>, %39, %cst_18 [1, 2] : vector<1x1x128xf32> to vector<1xf32>
    %41 = vector.shape_cast %40 : vector<1xf32> to vector<1x1x1xf32>
    %42 = vector.extract %41[0, 0, 0] : f32 from vector<1x1x1xf32>
    %43 = arith.mulf %35, %35 : vector<16x128xf32>
    %cst_19 = arith.constant dense<0.000000e+00> : vector<128xf32>
    %44 = vector.multi_reduction <add>, %43, %cst_19 [0] : vector<16x128xf32> to vector<128xf32>
    %45 = vector.shape_cast %44 : vector<128xf32> to vector<1x128xf32>
    %46 = vector.shape_cast %45 : vector<1x128xf32> to vector<1x1x128xf32>
    %cst_20 = arith.constant dense<0.000000e+00> : vector<1xf32>
    %47 = vector.multi_reduction <add>, %46, %cst_20 [1, 2] : vector<1x1x128xf32> to vector<1xf32>
    %48 = vector.shape_cast %47 : vector<1xf32> to vector<1x1x1xf32>
    %49 = vector.extract %48[0, 0, 0] : f32 from vector<1x1x1xf32>
    %50 = math.sqrt %49 : f32
    %cst_21 = arith.constant 9.99999996E-13 : f32
    %51 = arith.maximumf %50, %cst_21 : f32
    %52 = arith.divf %42, %51 : f32
    %53 = arith.cmpf ogt, %52, %26 : f32
    %54 = arith.select %53, %52, %26 : f32
    %cst_22 = arith.constant 1.562500e-02 : f32
    %55 = arith.select %53, %cst_22, %27 : f32
    %cst_23 = arith.constant 6.400000e+01 : f32
    %56 = arith.select %53, %cst_23, %28 : f32
    %cst_24 = arith.constant 3.200000e+01 : f32
    %57 = vector.broadcast %cst_24 : f32 to vector<16x128xf32>
    %58 = arith.mulf %0, %57 : vector<16x128xf32>
    %59 = math.roundeven %58 : vector<16x128xf32>
    %cst_25 = arith.constant -1.280000e+02 : f32
    %cst_26 = arith.constant 1.270000e+02 : f32
    %60 = vector.broadcast %cst_25 : f32 to vector<16x128xf32>
    %61 = arith.maximumf %60, %59 : vector<16x128xf32>
    %62 = vector.broadcast %cst_26 : f32 to vector<16x128xf32>
    %63 = arith.minimumf %62, %61 : vector<16x128xf32>
    %64 = arith.mulf %0, %63 : vector<16x128xf32>
    %cst_27 = arith.constant dense<0.000000e+00> : vector<128xf32>
    %65 = vector.multi_reduction <add>, %64, %cst_27 [0] : vector<16x128xf32> to vector<128xf32>
    %66 = vector.shape_cast %65 : vector<128xf32> to vector<1x128xf32>
    %67 = vector.shape_cast %66 : vector<1x128xf32> to vector<1x1x128xf32>
    %cst_28 = arith.constant dense<0.000000e+00> : vector<1xf32>
    %68 = vector.multi_reduction <add>, %67, %cst_28 [1, 2] : vector<1x1x128xf32> to vector<1xf32>
    %69 = vector.shape_cast %68 : vector<1xf32> to vector<1x1x1xf32>
    %70 = vector.extract %69[0, 0, 0] : f32 from vector<1x1x1xf32>
    %71 = arith.mulf %63, %63 : vector<16x128xf32>
    %cst_29 = arith.constant dense<0.000000e+00> : vector<128xf32>
    %72 = vector.multi_reduction <add>, %71, %cst_29 [0] : vector<16x128xf32> to vector<128xf32>
    %73 = vector.shape_cast %72 : vector<128xf32> to vector<1x128xf32>
    %74 = vector.shape_cast %73 : vector<1x128xf32> to vector<1x1x128xf32>
    %cst_30 = arith.constant dense<0.000000e+00> : vector<1xf32>
    %75 = vector.multi_reduction <add>, %74, %cst_30 [1, 2] : vector<1x1x128xf32> to vector<1xf32>
    %76 = vector.shape_cast %75 : vector<1xf32> to vector<1x1x1xf32>
    %77 = vector.extract %76[0, 0, 0] : f32 from vector<1x1x1xf32>
    %78 = math.sqrt %77 : f32
    %cst_31 = arith.constant 9.99999996E-13 : f32
    %79 = arith.maximumf %78, %cst_31 : f32
    %80 = arith.divf %70, %79 : f32
    %81 = arith.cmpf ogt, %80, %54 : f32
    %82 = arith.select %81, %80, %54 : f32
    %cst_32 = arith.constant 3.125000e-02 : f32
    %83 = arith.select %81, %cst_32, %55 : f32
    %cst_33 = arith.constant 3.200000e+01 : f32
    %84 = arith.select %81, %cst_33, %56 : f32
    %cst_34 = arith.constant 1.600000e+01 : f32
    %85 = vector.broadcast %cst_34 : f32 to vector<16x128xf32>
    %86 = arith.mulf %0, %85 : vector<16x128xf32>
    %87 = math.roundeven %86 : vector<16x128xf32>
    %cst_35 = arith.constant -1.280000e+02 : f32
    %cst_36 = arith.constant 1.270000e+02 : f32
    %88 = vector.broadcast %cst_35 : f32 to vector<16x128xf32>
    %89 = arith.maximumf %88, %87 : vector<16x128xf32>
    %90 = vector.broadcast %cst_36 : f32 to vector<16x128xf32>
    %91 = arith.minimumf %90, %89 : vector<16x128xf32>
    %92 = arith.mulf %0, %91 : vector<16x128xf32>
    %cst_37 = arith.constant dense<0.000000e+00> : vector<128xf32>
    %93 = vector.multi_reduction <add>, %92, %cst_37 [0] : vector<16x128xf32> to vector<128xf32>
    %94 = vector.shape_cast %93 : vector<128xf32> to vector<1x128xf32>
    %95 = vector.shape_cast %94 : vector<1x128xf32> to vector<1x1x128xf32>
    %cst_38 = arith.constant dense<0.000000e+00> : vector<1xf32>
    %96 = vector.multi_reduction <add>, %95, %cst_38 [1, 2] : vector<1x1x128xf32> to vector<1xf32>
    %97 = vector.shape_cast %96 : vector<1xf32> to vector<1x1x1xf32>
    %98 = vector.extract %97[0, 0, 0] : f32 from vector<1x1x1xf32>
    %99 = arith.mulf %91, %91 : vector<16x128xf32>
    %cst_39 = arith.constant dense<0.000000e+00> : vector<128xf32>
    %100 = vector.multi_reduction <add>, %99, %cst_39 [0] : vector<16x128xf32> to vector<128xf32>
    %101 = vector.shape_cast %100 : vector<128xf32> to vector<1x128xf32>
    %102 = vector.shape_cast %101 : vector<1x128xf32> to vector<1x1x128xf32>
    %cst_40 = arith.constant dense<0.000000e+00> : vector<1xf32>
    %103 = vector.multi_reduction <add>, %102, %cst_40 [1, 2] : vector<1x1x128xf32> to vector<1xf32>
    %104 = vector.shape_cast %103 : vector<1xf32> to vector<1x1x1xf32>
    %105 = vector.extract %104[0, 0, 0] : f32 from vector<1x1x1xf32>
    %106 = math.sqrt %105 : f32
    %cst_41 = arith.constant 9.99999996E-13 : f32
    %107 = arith.maximumf %106, %cst_41 : f32
    %108 = arith.divf %98, %107 : f32
    %109 = arith.cmpf ogt, %108, %82 : f32
    %110 = arith.select %109, %108, %82 : f32
    %cst_42 = arith.constant 6.250000e-02 : f32
    %111 = arith.select %109, %cst_42, %83 : f32
    %cst_43 = arith.constant 1.600000e+01 : f32
    %112 = arith.select %109, %cst_43, %84 : f32
    %cst_44 = arith.constant 8.000000e+00 : f32
    %113 = vector.broadcast %cst_44 : f32 to vector<16x128xf32>
    %114 = arith.mulf %0, %113 : vector<16x128xf32>
    %115 = math.roundeven %114 : vector<16x128xf32>
    %cst_45 = arith.constant -1.280000e+02 : f32
    %cst_46 = arith.constant 1.270000e+02 : f32
    %116 = vector.broadcast %cst_45 : f32 to vector<16x128xf32>
    %117 = arith.maximumf %116, %115 : vector<16x128xf32>
    %118 = vector.broadcast %cst_46 : f32 to vector<16x128xf32>
    %119 = arith.minimumf %118, %117 : vector<16x128xf32>
    %120 = arith.mulf %0, %119 : vector<16x128xf32>
    %cst_47 = arith.constant dense<0.000000e+00> : vector<128xf32>
    %121 = vector.multi_reduction <add>, %120, %cst_47 [0] : vector<16x128xf32> to vector<128xf32>
    %122 = vector.shape_cast %121 : vector<128xf32> to vector<1x128xf32>
    %123 = vector.shape_cast %122 : vector<1x128xf32> to vector<1x1x128xf32>
    %cst_48 = arith.constant dense<0.000000e+00> : vector<1xf32>
    %124 = vector.multi_reduction <add>, %123, %cst_48 [1, 2] : vector<1x1x128xf32> to vector<1xf32>
    %125 = vector.shape_cast %124 : vector<1xf32> to vector<1x1x1xf32>
    %126 = vector.extract %125[0, 0, 0] : f32 from vector<1x1x1xf32>
    %127 = arith.mulf %119, %119 : vector<16x128xf32>
    %cst_49 = arith.constant dense<0.000000e+00> : vector<128xf32>
    %128 = vector.multi_reduction <add>, %127, %cst_49 [0] : vector<16x128xf32> to vector<128xf32>
    %129 = vector.shape_cast %128 : vector<128xf32> to vector<1x128xf32>
    %130 = vector.shape_cast %129 : vector<1x128xf32> to vector<1x1x128xf32>
    %cst_50 = arith.constant dense<0.000000e+00> : vector<1xf32>
    %131 = vector.multi_reduction <add>, %130, %cst_50 [1, 2] : vector<1x1x128xf32> to vector<1xf32>
    %132 = vector.shape_cast %131 : vector<1xf32> to vector<1x1x1xf32>
    %133 = vector.extract %132[0, 0, 0] : f32 from vector<1x1x1xf32>
    %134 = math.sqrt %133 : f32
    %cst_51 = arith.constant 9.99999996E-13 : f32
    %135 = arith.maximumf %134, %cst_51 : f32
    %136 = arith.divf %126, %135 : f32
    %137 = arith.cmpf ogt, %136, %110 : f32
    %138 = arith.select %137, %136, %110 : f32
    %cst_52 = arith.constant 1.250000e-01 : f32
    %139 = arith.select %137, %cst_52, %111 : f32
    %cst_53 = arith.constant 8.000000e+00 : f32
    %140 = arith.select %137, %cst_53, %112 : f32
    %cst_54 = arith.constant 4.000000e+00 : f32
    %141 = vector.broadcast %cst_54 : f32 to vector<16x128xf32>
    %142 = arith.mulf %0, %141 : vector<16x128xf32>
    %143 = math.roundeven %142 : vector<16x128xf32>
    %cst_55 = arith.constant -1.280000e+02 : f32
    %cst_56 = arith.constant 1.270000e+02 : f32
    %144 = vector.broadcast %cst_55 : f32 to vector<16x128xf32>
    %145 = arith.maximumf %144, %143 : vector<16x128xf32>
    %146 = vector.broadcast %cst_56 : f32 to vector<16x128xf32>
    %147 = arith.minimumf %146, %145 : vector<16x128xf32>
    %148 = arith.mulf %0, %147 : vector<16x128xf32>
    %cst_57 = arith.constant dense<0.000000e+00> : vector<128xf32>
    %149 = vector.multi_reduction <add>, %148, %cst_57 [0] : vector<16x128xf32> to vector<128xf32>
    %150 = vector.shape_cast %149 : vector<128xf32> to vector<1x128xf32>
    %151 = vector.shape_cast %150 : vector<1x128xf32> to vector<1x1x128xf32>
    %cst_58 = arith.constant dense<0.000000e+00> : vector<1xf32>
    %152 = vector.multi_reduction <add>, %151, %cst_58 [1, 2] : vector<1x1x128xf32> to vector<1xf32>
    %153 = vector.shape_cast %152 : vector<1xf32> to vector<1x1x1xf32>
    %154 = vector.extract %153[0, 0, 0] : f32 from vector<1x1x1xf32>
    %155 = arith.mulf %147, %147 : vector<16x128xf32>
    %cst_59 = arith.constant dense<0.000000e+00> : vector<128xf32>
    %156 = vector.multi_reduction <add>, %155, %cst_59 [0] : vector<16x128xf32> to vector<128xf32>
    %157 = vector.shape_cast %156 : vector<128xf32> to vector<1x128xf32>
    %158 = vector.shape_cast %157 : vector<1x128xf32> to vector<1x1x128xf32>
    %cst_60 = arith.constant dense<0.000000e+00> : vector<1xf32>
    %159 = vector.multi_reduction <add>, %158, %cst_60 [1, 2] : vector<1x1x128xf32> to vector<1xf32>
    %160 = vector.shape_cast %159 : vector<1xf32> to vector<1x1x1xf32>
    %161 = vector.extract %160[0, 0, 0] : f32 from vector<1x1x1xf32>
    %162 = math.sqrt %161 : f32
    %cst_61 = arith.constant 9.99999996E-13 : f32
    %163 = arith.maximumf %162, %cst_61 : f32
    %164 = arith.divf %154, %163 : f32
    %165 = arith.cmpf ogt, %164, %138 : f32
    %166 = arith.select %165, %164, %138 : f32
    %cst_62 = arith.constant 2.500000e-01 : f32
    %167 = arith.select %165, %cst_62, %139 : f32
    %cst_63 = arith.constant 4.000000e+00 : f32
    %168 = arith.select %165, %cst_63, %140 : f32
    %cst_64 = arith.constant 2.000000e+00 : f32
    %169 = vector.broadcast %cst_64 : f32 to vector<16x128xf32>
    %170 = arith.mulf %0, %169 : vector<16x128xf32>
    %171 = math.roundeven %170 : vector<16x128xf32>
    %cst_65 = arith.constant -1.280000e+02 : f32
    %cst_66 = arith.constant 1.270000e+02 : f32
    %172 = vector.broadcast %cst_65 : f32 to vector<16x128xf32>
    %173 = arith.maximumf %172, %171 : vector<16x128xf32>
    %174 = vector.broadcast %cst_66 : f32 to vector<16x128xf32>
    %175 = arith.minimumf %174, %173 : vector<16x128xf32>
    %176 = arith.mulf %0, %175 : vector<16x128xf32>
    %cst_67 = arith.constant dense<0.000000e+00> : vector<128xf32>
    %177 = vector.multi_reduction <add>, %176, %cst_67 [0] : vector<16x128xf32> to vector<128xf32>
    %178 = vector.shape_cast %177 : vector<128xf32> to vector<1x128xf32>
    %179 = vector.shape_cast %178 : vector<1x128xf32> to vector<1x1x128xf32>
    %cst_68 = arith.constant dense<0.000000e+00> : vector<1xf32>
    %180 = vector.multi_reduction <add>, %179, %cst_68 [1, 2] : vector<1x1x128xf32> to vector<1xf32>
    %181 = vector.shape_cast %180 : vector<1xf32> to vector<1x1x1xf32>
    %182 = vector.extract %181[0, 0, 0] : f32 from vector<1x1x1xf32>
    %183 = arith.mulf %175, %175 : vector<16x128xf32>
    %cst_69 = arith.constant dense<0.000000e+00> : vector<128xf32>
    %184 = vector.multi_reduction <add>, %183, %cst_69 [0] : vector<16x128xf32> to vector<128xf32>
    %185 = vector.shape_cast %184 : vector<128xf32> to vector<1x128xf32>
    %186 = vector.shape_cast %185 : vector<1x128xf32> to vector<1x1x128xf32>
    %cst_70 = arith.constant dense<0.000000e+00> : vector<1xf32>
    %187 = vector.multi_reduction <add>, %186, %cst_70 [1, 2] : vector<1x1x128xf32> to vector<1xf32>
    %188 = vector.shape_cast %187 : vector<1xf32> to vector<1x1x1xf32>
    %189 = vector.extract %188[0, 0, 0] : f32 from vector<1x1x1xf32>
    %190 = math.sqrt %189 : f32
    %cst_71 = arith.constant 9.99999996E-13 : f32
    %191 = arith.maximumf %190, %cst_71 : f32
    %192 = arith.divf %182, %191 : f32
    %193 = arith.cmpf ogt, %192, %166 : f32
    %194 = arith.select %193, %192, %166 : f32
    %cst_72 = arith.constant 5.000000e-01 : f32
    %195 = arith.select %193, %cst_72, %167 : f32
    %cst_73 = arith.constant 2.000000e+00 : f32
    %196 = arith.select %193, %cst_73, %168 : f32
    %cst_74 = arith.constant 1.000000e+00 : f32
    %197 = vector.broadcast %cst_74 : f32 to vector<16x128xf32>
    %198 = arith.mulf %0, %197 : vector<16x128xf32>
    %199 = math.roundeven %198 : vector<16x128xf32>
    %cst_75 = arith.constant -1.280000e+02 : f32
    %cst_76 = arith.constant 1.270000e+02 : f32
    %200 = vector.broadcast %cst_75 : f32 to vector<16x128xf32>
    %201 = arith.maximumf %200, %199 : vector<16x128xf32>
    %202 = vector.broadcast %cst_76 : f32 to vector<16x128xf32>
    %203 = arith.minimumf %202, %201 : vector<16x128xf32>
    %204 = arith.mulf %0, %203 : vector<16x128xf32>
    %cst_77 = arith.constant dense<0.000000e+00> : vector<128xf32>
    %205 = vector.multi_reduction <add>, %204, %cst_77 [0] : vector<16x128xf32> to vector<128xf32>
    %206 = vector.shape_cast %205 : vector<128xf32> to vector<1x128xf32>
    %207 = vector.shape_cast %206 : vector<1x128xf32> to vector<1x1x128xf32>
    %cst_78 = arith.constant dense<0.000000e+00> : vector<1xf32>
    %208 = vector.multi_reduction <add>, %207, %cst_78 [1, 2] : vector<1x1x128xf32> to vector<1xf32>
    %209 = vector.shape_cast %208 : vector<1xf32> to vector<1x1x1xf32>
    %210 = vector.extract %209[0, 0, 0] : f32 from vector<1x1x1xf32>
    %211 = arith.mulf %203, %203 : vector<16x128xf32>
    %cst_79 = arith.constant dense<0.000000e+00> : vector<128xf32>
    %212 = vector.multi_reduction <add>, %211, %cst_79 [0] : vector<16x128xf32> to vector<128xf32>
    %213 = vector.shape_cast %212 : vector<128xf32> to vector<1x128xf32>
    %214 = vector.shape_cast %213 : vector<1x128xf32> to vector<1x1x128xf32>
    %cst_80 = arith.constant dense<0.000000e+00> : vector<1xf32>
    %215 = vector.multi_reduction <add>, %214, %cst_80 [1, 2] : vector<1x1x128xf32> to vector<1xf32>
    %216 = vector.shape_cast %215 : vector<1xf32> to vector<1x1x1xf32>
    %217 = vector.extract %216[0, 0, 0] : f32 from vector<1x1x1xf32>
    %218 = math.sqrt %217 : f32
    %cst_81 = arith.constant 9.99999996E-13 : f32
    %219 = arith.maximumf %218, %cst_81 : f32
    %220 = arith.divf %210, %219 : f32
    %221 = arith.cmpf ogt, %220, %194 : f32
    %cst_82 = arith.constant 1.000000e+00 : f32
    %222 = arith.select %221, %cst_82, %195 : f32
    %cst_83 = arith.constant 1.000000e+00 : f32
    %223 = arith.select %221, %cst_83, %196 : f32
    %224 = vector.broadcast %223 : f32 to vector<16x128xf32>
    %225 = arith.mulf %0, %224 : vector<16x128xf32>
    %226 = math.roundeven %225 : vector<16x128xf32>
    %cst_84 = arith.constant -1.280000e+02 : f32
    %cst_85 = arith.constant 1.270000e+02 : f32
    %227 = vector.broadcast %cst_84 : f32 to vector<16x128xf32>
    %228 = arith.maximumf %227, %226 : vector<16x128xf32>
    %229 = vector.broadcast %cst_85 : f32 to vector<16x128xf32>
    %230 = arith.minimumf %229, %228 : vector<16x128xf32>
    %231 = vector.broadcast %222 : f32 to vector<16x128xf32>
    %232 = arith.mulf %230, %231 : vector<16x128xf32>
    %c0_86 = arith.constant 0 : index
    %c0_87 = arith.constant 0 : index
    %233 = vector.load %arg2[%c0_86, %c0_87] : memref<16x128xf32, #tpu.memory_space<vmem>>, vector<16x128xf32>
    tpu.vector_store %arg2[%c0_86, %c0_87], %232 {strides = array<i32>} : memref<16x128xf32, #tpu.memory_space<vmem>>, vector<16x128xf32>,
    return
  }
  func.func @transform_0(%arg0: i32) -> (i32, i32) {
    %c0_i32 = arith.constant 0 : i32
    %c0_i32_0 = arith.constant 0 : i32
    %c0_i32_1 = arith.constant 0 : i32
    return %c0_i32, %c0_i32_0 : i32, i32
  }
  func.func @transform_1(%arg0: i32) -> (i32, i32) {
    %c0_i32 = arith.constant 0 : i32
    %c0_i32_0 = arith.constant 0 : i32
    %c0_i32_1 = arith.constant 0 : i32
    return %c0_i32, %c0_i32_0 : i32, i32
  }
}

</mosaic_0001>

<bundles_post_ra>
// kernel: quantizer_forward.1
= control target key start
LH: loop header
LB: loop body
LE: loop exit
PB: predicated region body
PF: predicated region fallthrough
CT: control target
= control target key end

     0   :  { %vm27_vm2 = vcmask 1040384   ;;  %s923_s13 = smov 1e-12   ;;  %s1129_s0 = inlined_call_operand.vmem [shape: f32[16,128], index: 0, kind: input, shape index: {}]   ;;  %s1130_s1 = inlined_call_operand.vmem [shape: f32[16,128], index: 1, kind: output, shape index: {}]  }
   0x1   :  { %v937_v0 = vld [vmem:[%s1129_s0] sm:$0xff]  ;;  %v942_v1 = vld [vmem:[%s1129_s0 + $0x8] sm:$0xff] }
   0x2   :  { %v10_v2 = vmul.f32 128.0, %v937_v0  ;;  %v11_v3 = vmul.f32 128.0, %v942_v1  ;;  %v91_v42 = vmul.f32 64.0, %v937_v0  ;;  %v92_v43 = vmul.f32 64.0, %v942_v1 }
   0x4   :  { %v682_v4 = vcvt.f32.s32 %v10_v2  ;;  %v680_v5 = vand.u32 2147483647, %v10_v2  ;;  %v690_v6 = vcvt.f32.s32 %v11_v3  ;;  %v685_v8 = vand.u32 2147483648, %v10_v2 }
   0x5   :  { %v688_v9 = vand.u32 2147483647, %v11_v3  ;;  %v693_v11 = vand.u32 2147483648, %v11_v3  ;;  %v706_v44 = vcvt.f32.s32 %v91_v42  ;;  %v714_v45 = vcvt.f32.s32 %v92_v43 }
   0x6   :  { %v683_v7 = vcvt.s32.f32 %v682_v4  ;;  %v691_v10 = vcvt.s32.f32 %v690_v6  ;;  %vm681_vm0 = vcmp.lt.f32.partialorder %v680_v5, 8388608.0  ;;  %v709_v49 = vand.u32 2147483648, %v91_v42 }
   0x7   :  { %vm689_vm1 = vcmp.lt.f32.partialorder %v688_v9, 8388608.0  ;;  %v707_v46 = vcvt.s32.f32 %v706_v44  ;;  %v715_v47 = vcvt.s32.f32 %v714_v45  ;;  %v717_v51 = vand.u32 2147483648, %v92_v43 }
   0x8   :  { %v684_v12 = vand.u32 2147483647, %v683_v7  ;;  %v692_v13 = vand.u32 2147483647, %v691_v10  ;;  %v704_v52 = vand.u32 2147483647, %v91_v42 }
   0x9   :  { %v708_v48 = vand.u32 2147483647, %v707_v46  ;;  %v716_v50 = vand.u32 2147483647, %v715_v47  ;;  %v712_v53 = vand.u32 2147483647, %v92_v43 }
   0xa   :  { %v686_v14 = vor.u32 %v685_v8, %v684_v12  ;;  %v694_v15 = vor.u32 %v693_v11, %v692_v13  ;;  %vm705_vm3 = vcmp.lt.f32.partialorder %v704_v52, 8388608.0  ;;  %v173_v45 = vmul.f32 32.0, %v937_v0 }
   0xb   :  { %v710_v54 = vor.u32 %v709_v49, %v708_v48  ;;  %v718_v55 = vor.u32 %v717_v51, %v716_v50  ;;  %vm713_vm4 = vcmp.lt.f32.partialorder %v712_v53, 8388608.0  ;;  %v174_v46 = vmul.f32 32.0, %v942_v1 }
   0xc   :  { %v687_v16 = vsel %vm681_vm0, %v686_v14, %v10_v2  ;;  %v695_v17 = vsel %vm689_vm1, %v694_v15, %v11_v3  ;;  %v730_v47 = vcvt.f32.s32 %v173_v45  ;;  %v733_v52 = vand.u32 2147483648, %v173_v45 }
   0xd   :  { %v14_v18 = vmax.f32 %v687_v16, -128.0  ;;  %v15_v19 = vmax.f32 %v695_v17, -128.0  ;;  %v711_v56 = vsel %vm705_vm3, %v710_v54, %v91_v42  ;;  %v719_v57 = vsel %vm713_vm4, %v718_v55, %v92_v43 }
   0xe   :  { %v95_v58 = vmax.f32 %v711_v56, -128.0  ;;  %v96_v59 = vmax.f32 %v719_v57, -128.0  ;;  %v738_v48 = vcvt.f32.s32 %v174_v46  ;;  %v731_v49 = vcvt.s32.f32 %v730_v47 }
   0xf   :  { %v16_v20 = vmin.f32 %v14_v18, 127.0  ;;  %v17_v21 = vmin.f32 %v15_v19, 127.0  ;;  %v741_v54 = vand.u32 2147483648, %v174_v46  ;;  %v728_v55 = vand.u32 2147483647, %v173_v45 }
  0x10   :  { %v97_v60 = vmin.f32 %v95_v58, 127.0  ;;  %v98_v61 = vmin.f32 %v96_v59, 127.0  ;;  %v739_v50 = vcvt.s32.f32 %v738_v48  ;;  %v732_v51 = vand.u32 2147483647, %v731_v49 }
  0x11   :  { %v18_v22 = vmul.f32 %v16_v20, %v937_v0  ;;  %v38_v23 = vmul.f32 %v16_v20, %v16_v20  ;;  %v19_v24 = vmul.f32 %v17_v21, %v942_v1  ;;  %v39_v25 = vmul.f32 %v17_v21, %v17_v21 }
  0x12   :  { %v99_v62 = vmul.f32 %v97_v60, %v937_v0  ;;  %v100_v63 = vmul.f32 %v98_v61, %v942_v1  ;;  %v118_v6 = vmul.f32 %v97_v60, %v97_v60  ;;  %v119_v7 = vmul.f32 %v98_v61, %v98_v61 }
  0x13   :  { %v20_v26 = vadd.f32 %v19_v24, %v18_v22  ;;  %v40_v27 = vadd.f32 %v39_v25, %v38_v23  ;;  %v740_v53 = vand.u32 2147483647, %v739_v50  ;;  %v736_v56 = vand.u32 2147483647, %v174_v46 }
  0x14   :  { %v101_v2 = vadd.f32 %v100_v63, %v99_v62  ;;  %v120_v9 = vadd.f32 %v119_v7, %v118_v6  ;;  %v734_v57 = vor.u32 %v733_v52, %v732_v51  ;;  %vm729_vm7 = vcmp.lt.f32.partialorder %v728_v55, 8388608.0 }
  0x15   :  { %v21_v28 = vrot.slane %v20_v26, 4  ;;  %v41_v29 = vrot.slane %v40_v27, 4  ;;  %v742_v58 = vor.u32 %v741_v54, %v740_v53  ;;  %vm737_vm8 = vcmp.lt.f32.partialorder %v736_v56, 8388608.0 }
  0x16   :  { %v102_v3 = vrot.slane %v101_v2, 4  ;;  %v121_v11 = vrot.slane %v120_v9, 4  ;;  %v735_v59 = vsel %vm729_vm7, %v734_v57, %v173_v45 }
  0x17   :  { %v22_v30 = vadd.f32 %v21_v28, %v20_v26  ;;  %v42_v31 = vadd.f32 %v41_v29, %v40_v27  ;;  %v743_v60 = vsel %vm737_vm8, %v742_v58, %v174_v46  ;;  %v177_v61 = vmax.f32 %v735_v59, -128.0 }
  0x18   :  { %v103_v4 = vadd.f32 %v102_v3, %v101_v2  ;;  %v122_v13 = vadd.f32 %v121_v11, %v120_v9  ;;  %v178_v62 = vmax.f32 %v743_v60, -128.0  ;;  %v255_v59 = vmul.f32 16.0, %v937_v0 }
  0x19   :  { %v23_v32 = vrot.slane %v22_v30, 2  ;;  %v43_v33 = vrot.slane %v42_v31, 2  ;;  %v179_v63 = vmin.f32 %v177_v61, 127.0  ;;  %v256_v60 = vmul.f32 16.0, %v942_v1 }
  0x1a   :  { %v104_v5 = vrot.slane %v103_v4, 2  ;;  %v123_v15 = vrot.slane %v122_v13, 2  ;;  %v180_v2 = vmin.f32 %v178_v62, 127.0  ;;  %v754_v61 = vcvt.f32.s32 %v255_v59 }
  0x1b   :  { %v24_v34 = vadd.f32 %v23_v32, %v22_v30  ;;  %v44_v35 = vadd.f32 %v43_v33, %v42_v31  ;;  %v181_v3 = vmul.f32 %v179_v63, %v937_v0  ;;  %v762_v62 = vcvt.f32.s32 %v256_v60 }
  0x1c   :  { %v105_v8 = vadd.f32 %v104_v5, %v103_v4  ;;  %v124_v16 = vadd.f32 %v123_v15, %v122_v13  ;;  %v182_v4 = vmul.f32 %v180_v2, %v942_v1  ;;  %v201_v11 = vmul.f32 %v180_v2, %v180_v2 }
  0x1d   :  { %v25_v36 = vrot.slane %v24_v34, 1  ;;  %v45_v38 = vrot.slane %v44_v35, 1  ;;  %v763_v2 = vcvt.s32.f32 %v762_v62 }
  0x1e   :  { %v106_v10 = vrot.slane %v105_v8, 1  ;;  %v125_v17 = vrot.slane %v124_v16, 1  ;;  %v183_v5 = vadd.f32 %v182_v4, %v181_v3  ;;  %v757_v4 = vand.u32 2147483648, %v255_v59 }
  0x1f   :  { %v26_v37 = vadd.f32 %v25_v36, %v24_v34  ;;  %v46_v40 = vadd.f32 %v45_v38, %v44_v35 }
  0x20   :  { %v107_v12 = vadd.f32 %v106_v10, %v105_v8  ;;  %v126_v18 = vadd.f32 %v125_v17, %v124_v16  ;;  %v184_v6 = vrot.slane %v183_v5, 4  ;;  %v200_v10 = vmul.f32 %v179_v63, %v179_v63 }
  0x21   :  { %v28_v39 = vsel %vm27_vm2, %v26_v37, 0.0  ;;  %v47_v41 = vsel %vm27_vm2, %v46_v40, 0.0  ;;  %v755_v63 = vcvt.s32.f32 %v754_v61 }
  0x22   :  { %29 = vadd.xlane.f32.xlu0 %v28_v39  ;;  %v108_v14 = vsel %vm27_vm2, %v107_v12, 0.0  ;;  %v127_v19 = vsel %vm27_vm2, %v126_v18, 0.0  ;;  %v185_v7 = vadd.f32 %v184_v6, %v183_v5  ;;  %v202_v13 = vadd.f32 %v201_v11, %v200_v10 }
  0x23   :  { %109 = vadd.xlane.f32.xlu1 %v108_v14  ;;  %v756_v3 = vand.u32 2147483647, %v755_v63  ;;  %v764_v5 = vand.u32 2147483647, %v763_v2  ;;  %v765_v6 = vand.u32 2147483648, %v256_v60 }
  0x24   :  { %v186_v8 = vrot.slane %v185_v7, 2  ;;  %v203_v15 = vrot.slane %v202_v13, 4 }
  0x25   :  { %v766_v10 = vor.u32 %v765_v6, %v764_v5 }
  0x26   :  { %v187_v9 = vadd.f32 %v186_v8, %v185_v7  ;;  %v204_v17 = vadd.f32 %v203_v15, %v202_v13  ;;  %v752_v7 = vand.u32 2147483647, %v255_v59  ;;  %v760_v8 = vand.u32 2147483647, %v256_v60 }
  0x28   :  { %v188_v12 = vrot.slane %v187_v9, 1  ;;  %vm753_vm15 = vcmp.lt.f32.partialorder %v752_v7, 8388608.0  ;;  %vm761_vm0 = vcmp.lt.f32.partialorder %v760_v8, 8388608.0 }
  0x2a   :  { %48 = vadd.xlane.f32.xlu0 %v47_v41  ;;  %v189_v14 = vadd.f32 %v188_v12, %v187_v9  ;;  %v758_v9 = vor.u32 %v757_v4, %v756_v3  ;;  %v767_v12 = vsel %vm761_vm0, %v766_v10, %v256_v60 }
  0x2b   :  { %128 = vadd.xlane.f32.xlu1 %v127_v19  ;;  %v205_v19 = vrot.slane %v204_v17, 2 }
  0x2c   :  { %v190_v16 = vsel %vm27_vm2, %v189_v14, 0.0  ;;  %v759_v11 = vsel %vm753_vm15, %v758_v9, %v255_v59  ;;  %v260_v14 = vmax.f32 %v767_v12, -128.0  ;;  %v338_v12 = vmul.f32 8.0, %v942_v1 }
  0x2d   :  { %191 = vadd.xlane.f32.xlu2 %v190_v16  ;;  %v259_v13 = vmax.f32 %v759_v11, -128.0  ;;  %v337_v11 = vmul.f32 8.0, %v937_v0 }
  0x2e   :  { %v262_v16 = vmin.f32 %v260_v14, 127.0  ;;  %v786_v14 = vcvt.f32.s32 %v338_v12 }
  0x2f   :  { %v261_v15 = vmin.f32 %v259_v13, 127.0  ;;  %v778_v13 = vcvt.f32.s32 %v337_v11 }
  0x95   :  { %v30_v20 = vpop.xlane.xlu0 %29 }
  0x96   :  { %v31_v21 = vrot.slane %v30_v20, 4  ;;  %v110_v18 = vpop.xlane.xlu1 %109 }
  0x98   :  { %v32_v22 = vadd.f32 %v31_v21, %v30_v20  ;;  %v206_v20 = vadd.f32 %v205_v19, %v204_v17  ;;  %v282_v17 = vmul.f32 %v261_v15, %v261_v15  ;;  %v263_v19 = vmul.f32 %v261_v15, %v937_v0 }
  0x99   :  { %v779_v15 = vcvt.s32.f32 %v778_v13 }
  0x9a   :  { %v33_v23 = vrot.slane %v32_v22, 2  ;;  %v207_v21 = vrot.slane %v206_v20, 1 }
  0x9c   :  { %v34_v24 = vadd.f32 %v33_v23, %v32_v22  ;;  %v208_v22 = vadd.f32 %v207_v21, %v206_v20  ;;  %v264_v20 = vmul.f32 %v262_v16, %v942_v1 }
  0x9d   :  { %v49_v25 = vpop.xlane.xlu0 %48 }
  0x9e   :  { %v50_v26 = vrot.slane %v49_v25, 4  ;;  %v35_v27 = vrot.slane %v34_v24, 1  ;;  %v209_v23 = vsel %vm27_vm2, %v208_v22, 0.0  ;;  %v265_v22 = vadd.f32 %v264_v20, %v263_v19 }
  0x9f   :  { %210 = vadd.xlane.f32.xlu2 %v209_v23  ;;  %v789_v20 = vand.u32 2147483648, %v338_v12 }
  0xa0   :  { %v51_v28 = vadd.f32 %v50_v26, %v49_v25  ;;  %v36_v29 = vadd.f32 %v35_v27, %v34_v24  ;;  %v129_v24 = vpop.xlane.xlu1 %128  ;;  %v111_v25 = vrot.slane %v110_v18, 4 }
  0xa1   :  { %v130_v26 = vrot.slane %v129_v24, 4 }
  0xa2   :  { %v52_v30 = vrot.slane %v51_v28, 2  ;;  %696 = vpush %v36_v29 }
  0xa3   :  { %v131_v29 = vadd.f32 %v130_v26, %v129_v24  ;;  %v266_v24 = vrot.slane %v265_v22, 4 }
  0xa4   :  { %v53_v31 = vadd.f32 %v52_v30, %v51_v28  ;;  %v112_v28 = vadd.f32 %v111_v25, %v110_v18  ;;  %v283_v18 = vmul.f32 %v262_v16, %v262_v16  ;;  %v787_v16 = vcvt.s32.f32 %v786_v14 }
  0xa5   :  { %v267_v26 = vadd.f32 %v266_v24, %v265_v22  ;;  %v784_v22 = vand.u32 2147483647, %v338_v12 }
  0xa6   :  { %v54_v32 = vrot.slane %v53_v31, 1  ;;  %v113_v30 = vrot.slane %v112_v28, 2  ;;  %v284_v21 = vadd.f32 %v283_v18, %v282_v17  ;;  %v780_v17 = vand.u32 2147483647, %v779_v15 }
  0xa7   :  { %v781_v18 = vand.u32 2147483648, %v337_v11  ;;  %v788_v19 = vand.u32 2147483647, %v787_v16 }
  0xa8   :  { %v55_v33 = vadd.f32 %v54_v32, %v53_v31  ;;  %v132_v31 = vrot.slane %v131_v29, 2  ;;  %v285_v23 = vrot.slane %v284_v21, 4 }
  0xa9   :  { %v790_v24 = vor.u32 %v789_v20, %v788_v19 }
  0xaa   :  { %698 = vpush %v55_v33  ;;  %v286_v25 = vadd.f32 %v285_v23, %v284_v21  ;;  %v776_v21 = vand.u32 2147483647, %v337_v11  ;;  %v782_v23 = vor.u32 %v781_v18, %v780_v17 }
  0xac   :  { %vm777_vm8 = vcmp.lt.f32.partialorder %v776_v21, 8388608.0 }
  0xd3   :  { %s956_s10 = spop %696 }
  0xdb   :  { %s699_s11 = spop %698 }
  0xdc   :  { %v57_v34 = vstv %s699_s11 }
  0xdd   :  { %889 = vrsqrt.f32 %v57_v34  ;;  %vm65_vm5 = vcmp.eq.f32.partialorder %v57_v34, inf  ;;  %v68_v42 = vand.u32 2147483648, %v57_v34  ;;  %vm67_vm6 = vcmp.eq.f32.partialorder %v57_v34, 0.0 }
  0xe3   :  { %v890_v35 = vpop.eup %889 }
  0xe4   :  { %v59_v36 = vmul.f32 %v890_v35, %v57_v34 }
  0xe6   :  { %v60_v37 = vmul.f32 %v890_v35, %v59_v36  ;;  %v133_v36 = vadd.f32 %v132_v31, %v131_v29  ;;  %v268_v29 = vrot.slane %v267_v26, 2 }
  0xe8   :  { %v61_v38 = vmul.f32 0.5, %v60_v37  ;;  %v269_v31 = vadd.f32 %v268_v29, %v267_v26 }
  0xea   :  { %v62_v39 = vsub.f32 1.5, %v61_v38 }
  0xec   :  { %v63_v40 = vmul.f32 %v890_v35, %v62_v39 }
  0xee   :  { %v64_v41 = vmul.f32 %v63_v40, %v57_v34 }
  0xf0   :  { %v66_v43 = vsel %vm65_vm5, %v57_v34, %v64_v41  ;;  %v114_v34 = vadd.f32 %v113_v30, %v112_v28  ;;  %v287_v28 = vrot.slane %v286_v25, 2 }
  0xf1   :  { %v69_v44 = vsel %vm67_vm6, %v68_v42, %v66_v43  ;;  %v134_v42 = vrot.slane %v133_v36, 1 }
  0xf2   :  { %700 = vpush %v69_v44  ;;  %v115_v40 = vrot.slane %v114_v34, 1  ;;  %v288_v30 = vadd.f32 %v287_v28, %v286_v25  ;;  %v783_v25 = vsel %vm777_vm8, %v782_v23, %v337_v11 }
  0xf3   :  { %v135_v47 = vadd.f32 %v134_v42, %v133_v36 }
  0xf4   :  { %v116_v46 = vadd.f32 %v115_v40, %v114_v34 }
 0x123   :  { %s701_s12 = spop %700 }
 0x124   :  { %s71_s14 = smax.f32 %s923_s13, %s701_s12 }
 0x125   :  { %v72_v27 = vstv %s71_s14 }
 0x126   :  { %891 = vrcp.f32 %v72_v27  ;;  %v84_v37 = vand.u32 2147483648, %v72_v27  ;;  %v82_v39 = vand.u32 2147483647, %v72_v27  ;;  %vm78_vm10 = vweird.f32 %v72_v27 }
 0x128   :  { %v85_v43 = vor.u32 1.1754944e-38, %v84_v37  ;;  %vm83_vm12 = vcmp.eq.f32.partialorder %v82_v39, 8.507059e+37 }
 0x12c   :  { %v892_v32 = vpop.eup %891 }
 0x12d   :  { %v74_v33 = vmul.f32 %v892_v32, %v72_v27  ;;  %vm79_vm9 = vweird.f32 %v892_v32  ;;  %v192_v27 = vpop.xlane.xlu2 %191 }
 0x12e   :  { %vm80_vm11 = vmor %vm78_vm10, %vm79_vm9  ;;  %v193_v39 = vrot.slane %v192_v27, 4  ;;  %vm785_vm9 = vcmp.lt.f32.partialorder %v784_v22, 8388608.0 }
 0x12f   :  { %v75_v35 = vsub.f32 1.0, %v74_v33  ;;  %v270_v33 = vrot.slane %v269_v31, 1  ;;  %v791_v26 = vsel %vm785_vm9, %v790_v24, %v338_v12 }
 0x130   :  { %v194_v42 = vadd.f32 %v193_v39, %v192_v27  ;;  %v341_v27 = vmax.f32 %v783_v25, -128.0  ;;  %v342_v28 = vmax.f32 %v791_v26, -128.0  ;;  %v419_v25 = vmul.f32 4.0, %v937_v0 }
 0x131   :  { %v76_v38 = vmul.f32 %v892_v32, %v75_v35  ;;  %v271_v35 = vadd.f32 %v270_v33, %v269_v31  ;;  %v420_v26 = vmul.f32 4.0, %v942_v1 }
 0x132   :  { %v343_v29 = vmin.f32 %v341_v27, 127.0  ;;  %v802_v27 = vcvt.f32.s32 %v419_v25 }
 0x133   :  { %v77_v41 = vadd.f32 %v892_v32, %v76_v38  ;;  %v272_v37 = vsel %vm27_vm2, %v271_v35, 0.0 }
 0x134   :  { %273 = vadd.xlane.f32.xlu0 %v272_v37  ;;  %v345_v31 = vmul.f32 %v343_v29, %v937_v0  ;;  %v364_v33 = vmul.f32 %v343_v29, %v343_v29  ;;  %v803_v29 = vcvt.s32.f32 %v802_v27 }
 0x135   :  { %v81_v44 = vsel %vm80_vm11, %v892_v32, %v77_v41  ;;  %v289_v32 = vrot.slane %v288_v30, 1  ;;  %v211_v38 = vpop.xlane.xlu2 %210 }
 0x136   :  { %v86_v45 = vsel %vm83_vm12, %v85_v43, %v81_v44  ;;  %v212_v40 = vrot.slane %v211_v38, 4  ;;  %v195_v44 = vrot.slane %v194_v42, 2 }
 0x137   :  { %702 = vpush %v86_v45  ;;  %v290_v34 = vadd.f32 %v289_v32, %v288_v30  ;;  %v344_v30 = vmin.f32 %v342_v28, 127.0  ;;  %v810_v28 = vcvt.f32.s32 %v420_v26 }
 0x138   :  { %720 = vpush %v116_v46  ;;  %v213_v43 = vadd.f32 %v212_v40, %v211_v38 }
 0x139   :  { %722 = vpush %v135_v47  ;;  %v291_v36 = vsel %vm27_vm2, %v290_v34, 0.0  ;;  %v346_v32 = vmul.f32 %v344_v30, %v942_v1  ;;  %v365_v34 = vmul.f32 %v344_v30, %v344_v30  ;;  %v811_v30 = vcvt.s32.f32 %v810_v28 }
 0x13a   :  { %292 = vadd.xlane.f32.xlu1 %v291_v36  ;;  %v214_v45 = vrot.slane %v213_v43, 2 }
 0x13b   :  { %v347_v35 = vadd.f32 %v346_v32, %v345_v31  ;;  %v366_v36 = vadd.f32 %v365_v34, %v364_v33  ;;  %v804_v31 = vand.u32 2147483647, %v803_v29  ;;  %v805_v32 = vand.u32 2147483648, %v419_v25 }
 0x13c   :  { %v812_v33 = vand.u32 2147483647, %v811_v30  ;;  %v800_v34 = vand.u32 2147483647, %v419_v25 }
 0x13d   :  { %v348_v37 = vrot.slane %v347_v35, 4  ;;  %v367_v38 = vrot.slane %v366_v36, 4 }
 0x13e   :  { %vm801_vm0 = vcmp.lt.f32.partialorder %v800_v34, 8388608.0 }
 0x13f   :  { %v349_v39 = vadd.f32 %v348_v37, %v347_v35  ;;  %v368_v40 = vadd.f32 %v367_v38, %v366_v36  ;;  %v808_v35 = vand.u32 2147483647, %v420_v26  ;;  %v813_v36 = vand.u32 2147483648, %v420_v26 }
 0x140   :  { %v806_v37 = vor.u32 %v805_v32, %v804_v31 }
 0x141   :  { %v814_v38 = vor.u32 %v813_v36, %v812_v33 }
 0x168   :  { %s965_s15 = spop %702 }
 0x169   :  { %s967_s16 = spop %720  ;;  %s88_s20 = smul.f32 %s965_s15, %s956_s10 }
 0x16a   :  { %s723_s17 = spop %722 }
 0x16b   :  { %v137_v48 = vstv %s723_s17  ;;  %p89_p0 = scmp.gt.f32.partialorder %s88_s20, -1.0 }
 0x16c   :  { %893 = vrsqrt.f32 %v137_v48  ;;  %vm145_vm13 = vcmp.eq.f32.partialorder %v137_v48, inf  ;;  %v148_v56 = vand.u32 2147483648, %v137_v48  ;;  %vm147_vm14 = vcmp.eq.f32.partialorder %v137_v48, 0.0 }
 0x16d   :  { %s1133_s20 = smov (!%p89_p0, %s88_s20), -1.0 }
 0x172   :  { %v894_v49 = vpop.eup %893 }
 0x173   :  { %v139_v50 = vmul.f32 %v894_v49, %v137_v48 }
 0x175   :  { %v140_v51 = vmul.f32 %v894_v49, %v139_v50  ;;  %v215_v50 = vadd.f32 %v214_v45, %v213_v43 }
 0x177   :  { %v141_v52 = vmul.f32 0.5, %v140_v51 }
 0x179   :  { %v142_v53 = vsub.f32 1.5, %v141_v52 }
 0x17b   :  { %v143_v54 = vmul.f32 %v894_v49, %v142_v53 }
 0x17d   :  { %v144_v55 = vmul.f32 %v143_v54, %v137_v48 }
 0x17f   :  { %v146_v57 = vsel %vm145_vm13, %v137_v48, %v144_v55  ;;  %v196_v48 = vadd.f32 %v195_v44, %v194_v42  ;;  %v369_v42 = vrot.slane %v368_v40, 2 }
 0x180   :  { %v149_v58 = vsel %vm147_vm14, %v148_v56, %v146_v57  ;;  %v216_v56 = vrot.slane %v215_v50, 1 }
 0x181   :  { %724 = vpush %v149_v58  ;;  %v197_v54 = vrot.slane %v196_v48, 1  ;;  %v370_v44 = vadd.f32 %v369_v42, %v368_v40 }
 0x182   :  { %v217_v61 = vadd.f32 %v216_v56, %v215_v50 }
 0x183   :  { %v198_v60 = vadd.f32 %v197_v54, %v196_v48 }
 0x1b2   :  { %s725_s18 = spop %724 }
 0x1b3   :  { %s151_s19 = smax.f32 %s923_s13, %s725_s18 }
 0x1b4   :  { %v152_v41 = vstv %s151_s19 }
 0x1b5   :  { %895 = vrcp.f32 %v152_v41  ;;  %v164_v51 = vand.u32 2147483648, %v152_v41  ;;  %v162_v53 = vand.u32 2147483647, %v152_v41  ;;  %vm158_vm3 = vweird.f32 %v152_v41 }
 0x1b7   :  { %v165_v57 = vor.u32 1.1754944e-38, %v164_v51  ;;  %vm163_vm5 = vcmp.eq.f32.partialorder %v162_v53, 8.507059e+37  ;;  %v293_v51 = vpop.xlane.xlu1 %292 }
 0x1b8   :  { %v294_v54 = vrot.slane %v293_v51, 4 }
 0x1bb   :  { %v896_v46 = vpop.eup %895 }
 0x1bc   :  { %v154_v47 = vmul.f32 %v896_v46, %v152_v41  ;;  %vm159_vm1 = vweird.f32 %v896_v46  ;;  %v350_v41 = vrot.slane %v349_v39, 2 }
 0x1bd   :  { %vm160_vm4 = vmor %vm158_vm3, %vm159_vm1  ;;  %vm809_vm1 = vcmp.lt.f32.partialorder %v808_v35, 8388608.0 }
 0x1be   :  { %v155_v49 = vsub.f32 1.0, %v154_v47  ;;  %v351_v43 = vadd.f32 %v350_v41, %v349_v39  ;;  %v807_v39 = vsel %vm801_vm0, %v806_v37, %v419_v25  ;;  %v815_v40 = vsel %vm809_vm1, %v814_v38, %v420_v26  ;;  %v1041_v37 = vld [vmem:[%s1129_s0] sm:$0xff] }
 0x1bf   :  { %v423_v41 = vmax.f32 %v807_v39, -128.0  ;;  %v424_v42 = vmax.f32 %v815_v40, -128.0  ;;  %v501_v38 = vmul.f32 2.0, %v1041_v37  ;;  %v1047_v39 = vld [vmem:[%s1129_s0 + $0x8] sm:$0xff] }
 0x1c0   :  { %v156_v52 = vmul.f32 %v896_v46, %v155_v49  ;;  %v352_v45 = vrot.slane %v351_v43, 1  ;;  %v274_v49 = vpop.xlane.xlu0 %273  ;;  %v502_v40 = vmul.f32 2.0, %v1047_v39 }
 0x1c1   :  { %v275_v53 = vrot.slane %v274_v49, 4 }
 0x1c2   :  { %v157_v55 = vadd.f32 %v896_v46, %v156_v52  ;;  %v353_v47 = vadd.f32 %v352_v45, %v351_v43  ;;  %v425_v43 = vmin.f32 %v423_v41, 127.0  ;;  %v826_v41 = vcvt.f32.s32 %v501_v38 }
 0x1c3   :  { %v276_v56 = vadd.f32 %v275_v53, %v274_v49 }
 0x1c4   :  { %v161_v58 = vsel %vm160_vm4, %v896_v46, %v157_v55  ;;  %v371_v46 = vrot.slane %v370_v44, 1  ;;  %v354_v50 = vsel %vm27_vm2, %v353_v47, 0.0  ;;  %v446_v45 = vmul.f32 %v425_v43, %v425_v43 }
 0x1c5   :  { %v166_v59 = vsel %vm163_vm5, %v165_v57, %v161_v58  ;;  %355 = vadd.xlane.f32.xlu2 %v354_v50  ;;  %v295_v57 = vadd.f32 %v294_v54, %v293_v51  ;;  %v277_v58 = vrot.slane %v276_v56, 2 }
 0x1c6   :  { %726 = vpush %v166_v59  ;;  %v372_v48 = vadd.f32 %v371_v46, %v370_v44  ;;  %v426_v44 = vmin.f32 %v424_v42, 127.0  ;;  %v427_v46 = vmul.f32 %v425_v43, %v937_v0  ;;  %v834_v42 = vcvt.f32.s32 %v502_v40 }
 0x1c7   :  { %744 = vpush %v198_v60  ;;  %v296_v59 = vrot.slane %v295_v57, 2  ;;  %v827_v43 = vcvt.s32.f32 %v826_v41 }
 0x1c8   :  { %746 = vpush %v217_v61  ;;  %v373_v52 = vsel %vm27_vm2, %v372_v48, 0.0  ;;  %v447_v47 = vmul.f32 %v426_v44, %v426_v44  ;;  %v428_v48 = vmul.f32 %v426_v44, %v942_v1  ;;  %v835_v44 = vcvt.s32.f32 %v834_v42 }
 0x1c9   :  { %374 = vadd.xlane.f32.xlu0 %v373_v52 }
 0x1ca   :  { %v448_v49 = vadd.f32 %v447_v47, %v446_v45  ;;  %v429_v50 = vadd.f32 %v428_v48, %v427_v46  ;;  %v828_v45 = vand.u32 2147483647, %v827_v43  ;;  %v829_v46 = vand.u32 2147483648, %v501_v38 }
 0x1cb   :  { %v824_v47 = vand.u32 2147483647, %v501_v38  ;;  %v832_v48 = vand.u32 2147483647, %v502_v40 }
 0x1cc   :  { %v449_v51 = vrot.slane %v448_v49, 4  ;;  %v430_v52 = vrot.slane %v429_v50, 4 }
 0x1cd   :  { %vm825_vm9 = vcmp.lt.f32.partialorder %v824_v47, 8388608.0 }
 0x1ce   :  { %v450_v53 = vadd.f32 %v449_v51, %v448_v49  ;;  %v431_v54 = vadd.f32 %v430_v52, %v429_v50  ;;  %v836_v49 = vand.u32 2147483647, %v835_v44  ;;  %v830_v50 = vor.u32 %v829_v46, %v828_v45 }
 0x1cf   :  { %v837_v51 = vand.u32 2147483648, %v502_v40 }
 0x1d0   :  { %v831_v52 = vsel %vm825_vm9, %v830_v50, %v501_v38 }
 0x1f7   :  { %s727_s21 = spop %726 }
 0x1f8   :  { %s981_s22 = smul.f32 %s727_s21, %s967_s16  ;;  %s983_s23 = spop %744 }
 0x1f9   :  { %s747_s24 = spop %746 }
 0x1fa   :  { %p169_p1 = scmp.gt.f32.partialorder %s981_s22, %s1133_s20  ;;  %v219_v62 = vstv %s747_s24 }
 0x1fb   :  { %897 = vrsqrt.f32 %v219_v62  ;;  %vm227_vm6 = vcmp.eq.f32.partialorder %v219_v62, inf  ;;  %v230_v8 = vand.u32 2147483648, %v219_v62  ;;  %vm229_vm7 = vcmp.eq.f32.partialorder %v219_v62, 0.0 }
 0x1fc   :  { %s992_s25 = scalar_select %p169_p1, %s981_s22, %s1133_s20 }
 0x1fd   :  { %s171_s28 = scalar_select %p169_p1, 0.015625, 0.0078125 }
 0x1fe   :  { %s172_s4 = scalar_select %p169_p1, 64.0, 128.0 }
 0x201   :  { %v898_v63 = vpop.eup %897 }
 0x202   :  { %v221_v2 = vmul.f32 %v898_v63, %v219_v62 }
 0x204   :  { %v222_v3 = vmul.f32 %v898_v63, %v221_v2  ;;  %v297_v2 = vadd.f32 %v296_v59, %v295_v57 }
 0x206   :  { %v223_v4 = vmul.f32 0.5, %v222_v3 }
 0x208   :  { %v224_v5 = vsub.f32 1.5, %v223_v4 }
 0x20a   :  { %v225_v6 = vmul.f32 %v898_v63, %v224_v5 }
 0x20c   :  { %v226_v7 = vmul.f32 %v225_v6, %v219_v62 }
 0x20e   :  { %v228_v9 = vsel %vm227_vm6, %v219_v62, %v226_v7  ;;  %v278_v62 = vadd.f32 %v277_v58, %v276_v56  ;;  %v432_v56 = vrot.slane %v431_v54, 2 }
 0x20f   :  { %v231_v10 = vsel %vm229_vm7, %v230_v8, %v228_v9  ;;  %v298_v8 = vrot.slane %v297_v2, 1 }
 0x210   :  { %748 = vpush %v231_v10  ;;  %v279_v6 = vrot.slane %v278_v62, 1  ;;  %v433_v58 = vadd.f32 %v432_v56, %v431_v54  ;;  %v505_v54 = vmax.f32 %v831_v52, -128.0 }
 0x211   :  { %v299_v13 = vadd.f32 %v298_v8, %v297_v2 }
 0x212   :  { %v280_v12 = vadd.f32 %v279_v6, %v278_v62 }
 0x23c   :  { %v375_v2 = vpop.xlane.xlu0 %374 }
 0x241   :  { %s749_s26 = spop %748 }
 0x242   :  { %s233_s27 = smax.f32 %s923_s13, %s749_s26 }
 0x243   :  { %v234_v55 = vstv %s233_s27 }
 0x244   :  { %899 = vrcp.f32 %v234_v55  ;;  %v246_v3 = vand.u32 2147483648, %v234_v55  ;;  %v244_v5 = vand.u32 2147483647, %v234_v55  ;;  %vm240_vm11 = vweird.f32 %v234_v55 }
 0x246   :  { %v247_v9 = vor.u32 1.1754944e-38, %v246_v3  ;;  %vm245_vm13 = vcmp.eq.f32.partialorder %v244_v5, 8.507059e+37 }
 0x24a   :  { %v900_v60 = vpop.eup %899 }
 0x24b   :  { %v236_v61 = vmul.f32 %v900_v60, %v234_v55  ;;  %vm241_vm10 = vweird.f32 %v900_v60  ;;  %v451_v55 = vrot.slane %v450_v53, 2 }
 0x24c   :  { %vm242_vm12 = vmor %vm240_vm11, %vm241_vm10  ;;  %vm833_vm10 = vcmp.lt.f32.partialorder %v832_v48, 8388608.0 }
 0x24d   :  { %v237_v63 = vsub.f32 1.0, %v236_v61  ;;  %v452_v57 = vadd.f32 %v451_v55, %v450_v53  ;;  %v838_v53 = vor.u32 %v837_v51, %v836_v49 }
 0x24f   :  { %v238_v4 = vmul.f32 %v900_v60, %v237_v63  ;;  %v453_v59 = vrot.slane %v452_v57, 1  ;;  %v356_v63 = vpop.xlane.xlu2 %355  ;;  %v839_v55 = vsel %vm833_vm10, %v838_v53, %v502_v40  ;;  %v850_v53 = vcvt.f32.s32 %v1041_v37 }
 0x250   :  { %v357_v3 = vrot.slane %v356_v63, 4  ;;  %v506_v56 = vmax.f32 %v839_v55, -128.0 }
 0x251   :  { %v239_v7 = vadd.f32 %v900_v60, %v238_v4  ;;  %v454_v61 = vadd.f32 %v453_v59, %v452_v57  ;;  %v376_v4 = vrot.slane %v375_v2, 4  ;;  %v507_v57 = vmin.f32 %v505_v54, 127.0 }
 0x252   :  { %v358_v6 = vadd.f32 %v357_v3, %v356_v63  ;;  %v858_v54 = vcvt.f32.s32 %v1047_v39  ;;  %v851_v55 = vcvt.s32.f32 %v850_v53 }
 0x253   :  { %v243_v10 = vsel %vm242_vm12, %v900_v60, %v239_v7  ;;  %v434_v60 = vrot.slane %v433_v58, 1  ;;  %v455_v0 = vsel %vm27_vm2, %v454_v61, 0.0  ;;  %v377_v7 = vadd.f32 %v376_v4, %v375_v2 }
 0x254   :  { %v248_v11 = vsel %vm245_vm13, %v247_v9, %v243_v10  ;;  %456 = vadd.xlane.f32.xlu2 %v455_v0  ;;  %v359_v8 = vrot.slane %v358_v6, 2  ;;  %v528_v59 = vmul.f32 %v507_v57, %v507_v57 }
 0x255   :  { %750 = vpush %v248_v11  ;;  %v435_v62 = vadd.f32 %v434_v60, %v433_v58  ;;  %v378_v9 = vrot.slane %v377_v7, 2  ;;  %v508_v58 = vmin.f32 %v506_v56, 127.0  ;;  %v509_v60 = vmul.f32 %v1041_v37, %v507_v57 }
 0x256   :  { %768 = vpush %v280_v12  ;;  %v360_v12 = vadd.f32 %v359_v8, %v358_v6  ;;  %v859_v56 = vcvt.s32.f32 %v858_v54  ;;  %v852_v57 = vand.u32 2147483647, %v851_v55 }
 0x257   :  { %770 = vpush %v299_v13  ;;  %v436_v1 = vsel %vm27_vm2, %v435_v62, 0.0  ;;  %v529_v61 = vmul.f32 %v508_v58, %v508_v58  ;;  %v510_v62 = vmul.f32 %v1047_v39, %v508_v58  ;;  %v853_v58 = vand.u32 2147483648, %v1041_v37 }
 0x258   :  { %437 = vadd.xlane.f32.xlu1 %v436_v1 }
 0x259   :  { %v530_v63 = vadd.f32 %v529_v61, %v528_v59  ;;  %v511_v2 = vadd.f32 %v510_v62, %v509_v60  ;;  %v860_v59 = vand.u32 2147483647, %v859_v56  ;;  %v861_v60 = vand.u32 2147483648, %v1047_v39 }
 0x25a   :  { %v848_v61 = vand.u32 2147483647, %v1041_v37  ;;  %v856_v62 = vand.u32 2147483647, %v1047_v39 }
 0x25b   :  { %v531_v0 = vrot.slane %v530_v63, 4  ;;  %v512_v1 = vrot.slane %v511_v2, 4 }
 0x25c   :  { %vm849_vm1 = vcmp.lt.f32.partialorder %v848_v61, 8388608.0 }
 0x25d   :  { %v532_v3 = vadd.f32 %v531_v0, %v530_v63  ;;  %v513_v4 = vadd.f32 %v512_v1, %v511_v2  ;;  %v854_v63 = vor.u32 %v853_v58, %v852_v57  ;;  %v862_v2 = vor.u32 %v861_v60, %v860_v59 }
 0x25f   :  { %v514_v6 = vrot.slane %v513_v4, 2  ;;  %v855_v0 = vsel %vm849_vm1, %v854_v63, %v1041_v37 }
 0x261   :  { %v515_v8 = vadd.f32 %v514_v6, %v513_v4 }
 0x286   :  { %s751_s29 = spop %750 }
 0x287   :  { %s250_s30 = smul.f32 %s751_s29, %s983_s23  ;;  %s1005_s2 = spop %768 }
 0x288   :  { %s771_s3 = spop %770 }
 0x289   :  { %p251_p2 = scmp.gt.f32.partialorder %s250_s30, %s992_s25  ;;  %v301_v14 = vstv %s771_s3 }
 0x28a   :  { %901 = vrsqrt.f32 %v301_v14  ;;  %vm309_vm14 = vcmp.eq.f32.partialorder %v301_v14, inf  ;;  %v312_v22 = vand.u32 2147483648, %v301_v14  ;;  %vm311_vm15 = vcmp.eq.f32.partialorder %v301_v14, 0.0 }
 0x28b   :  { %s1135_s28 = smov (%p251_p2, %s171_s28), 0.03125  ;;  %s1137_s4 = smov (%p251_p2, %s172_s4), 32.0 }
 0x28c   :  { %s1139_s30 = smov (!%p251_p2, %s250_s30), %s992_s25 }
 0x290   :  { %v902_v15 = vpop.eup %901 }
 0x291   :  { %v303_v16 = vmul.f32 %v902_v15, %v301_v14 }
 0x293   :  { %v304_v17 = vmul.f32 %v902_v15, %v303_v16 }
 0x295   :  { %v305_v18 = vmul.f32 0.5, %v304_v17 }
 0x297   :  { %v306_v19 = vsub.f32 1.5, %v305_v18  ;;  %v361_v18 = vrot.slane %v360_v12, 1 }
 0x299   :  { %v307_v20 = vmul.f32 %v902_v15, %v306_v19 }
 0x29b   :  { %v308_v21 = vmul.f32 %v307_v20, %v301_v14 }
 0x29d   :  { %v310_v23 = vsel %vm309_vm14, %v301_v14, %v308_v21  ;;  %v379_v14 = vadd.f32 %v378_v9, %v377_v7 }
 0x29e   :  { %v313_v24 = vsel %vm311_vm15, %v312_v22, %v310_v23 }
 0x29f   :  { %772 = vpush %v313_v24  ;;  %v380_v20 = vrot.slane %v379_v14, 1  ;;  %v362_v24 = vadd.f32 %v361_v18, %v360_v12 }
 0x2a1   :  { %v381_v25 = vadd.f32 %v380_v20, %v379_v14 }
 0x2c7   :  { %v457_v14 = vpop.xlane.xlu2 %456 }
 0x2c8   :  { %v458_v18 = vrot.slane %v457_v14, 4 }
 0x2d0   :  { %s773_s5 = spop %772 }
 0x2d1   :  { %s315_s6 = smax.f32 %s923_s13, %s773_s5 }
 0x2d2   :  { %v316_v5 = vstv %s315_s6 }
 0x2d3   :  { %903 = vrcp.f32 %v316_v5  ;;  %v328_v15 = vand.u32 2147483648, %v316_v5  ;;  %v326_v17 = vand.u32 2147483647, %v316_v5  ;;  %vm322_vm4 = vweird.f32 %v316_v5 }
 0x2d5   :  { %v329_v21 = vor.u32 1.1754944e-38, %v328_v15  ;;  %vm327_vm6 = vcmp.eq.f32.partialorder %v326_v17, 8.507059e+37 }
 0x2d9   :  { %v904_v10 = vpop.eup %903 }
 0x2da   :  { %v318_v11 = vmul.f32 %v904_v10, %v316_v5  ;;  %vm323_vm3 = vweird.f32 %v904_v10  ;;  %v533_v5 = vrot.slane %v532_v3, 2 }
 0x2db   :  { %vm324_vm5 = vmor %vm322_vm4, %vm323_vm3  ;;  %vm857_vm3 = vcmp.lt.f32.partialorder %v856_v62, 8388608.0 }
 0x2dc   :  { %v319_v13 = vsub.f32 1.0, %v318_v11  ;;  %v534_v7 = vadd.f32 %v533_v5, %v532_v3  ;;  %v438_v11 = vpop.xlane.xlu1 %437  ;;  %v863_v1 = vsel %vm857_vm3, %v862_v2, %v1047_v39  ;;  %v585_v3 = vmax.f32 %v855_v0, -128.0 }
 0x2dd   :  { %v439_v17 = vrot.slane %v438_v11, 4  ;;  %v586_v4 = vmax.f32 %v863_v1, -128.0 }
 0x2de   :  { %v320_v16 = vmul.f32 %v904_v10, %v319_v13  ;;  %v535_v9 = vrot.slane %v534_v7, 1  ;;  %v587_v5 = vmin.f32 %v585_v3, 127.0 }
 0x2df   :  { %v440_v20 = vadd.f32 %v439_v17, %v438_v11  ;;  %v588_v6 = vmin.f32 %v586_v4, 127.0 }
 0x2e0   :  { %v321_v19 = vadd.f32 %v904_v10, %v320_v16  ;;  %v536_v12 = vadd.f32 %v535_v9, %v534_v7  ;;  %v589_v7 = vmul.f32 %v1041_v37, %v587_v5  ;;  %v608_v9 = vmul.f32 %v587_v5, %v587_v5 }
 0x2e2   :  { %v325_v22 = vsel %vm324_vm5, %v904_v10, %v321_v19  ;;  %v516_v10 = vrot.slane %v515_v8, 1  ;;  %v537_v15 = vsel %vm27_vm2, %v536_v12, 0.0 }
 0x2e3   :  { %v330_v23 = vsel %vm327_vm6, %v329_v21, %v325_v22  ;;  %538 = vadd.xlane.f32.xlu1 %v537_v15  ;;  %v459_v21 = vadd.f32 %v458_v18, %v457_v14  ;;  %v441_v22 = vrot.slane %v440_v20, 2 }
 0x2e4   :  { %774 = vpush %v330_v23  ;;  %v517_v13 = vadd.f32 %v516_v10, %v515_v8  ;;  %v590_v8 = vmul.f32 %v1047_v39, %v588_v6  ;;  %v609_v10 = vmul.f32 %v588_v6, %v588_v6 }
 0x2e5   :  { %792 = vpush %v362_v24  ;;  %v460_v23 = vrot.slane %v459_v21, 2 }
 0x2e6   :  { %794 = vpush %v381_v25  ;;  %v518_v16 = vsel %vm27_vm2, %v517_v13, 0.0  ;;  %v591_v11 = vadd.f32 %v590_v8, %v589_v7  ;;  %v610_v12 = vadd.f32 %v609_v10, %v608_v9 }
 0x2e7   :  { %519 = vadd.xlane.f32.xlu0 %v518_v16 }
 0x2e8   :  { %v592_v13 = vrot.slane %v591_v11, 4  ;;  %v611_v14 = vrot.slane %v610_v12, 4 }
 0x2ea   :  { %v593_v15 = vadd.f32 %v592_v13, %v591_v11  ;;  %v612_v16 = vadd.f32 %v611_v14, %v610_v12 }
 0x2ec   :  { %v594_v17 = vrot.slane %v593_v15, 2  ;;  %v613_v18 = vrot.slane %v612_v16, 2 }
 0x315   :  { %s775_s7 = spop %774 }
 0x316   :  { %s332_s8 = smul.f32 %s775_s7, %s1005_s2  ;;  %s1026_s9 = spop %792 }
 0x317   :  { %s795_s10 = spop %794 }
 0x318   :  { %p333_p3 = scmp.gt.f32.partialorder %s332_s8, %s1139_s30  ;;  %v383_v26 = vstv %s795_s10 }
 0x319   :  { %905 = vrsqrt.f32 %v383_v26  ;;  %vm391_vm7 = vcmp.eq.f32.partialorder %v383_v26, inf  ;;  %v394_v34 = vand.u32 2147483648, %v383_v26  ;;  %vm393_vm8 = vcmp.eq.f32.partialorder %v383_v26, 0.0 }
 0x31a   :  { %s1141_s28 = smov (%p333_p3, %s1135_s28), 0.0625  ;;  %s1143_s4 = smov (%p333_p3, %s1137_s4), 16.0 }
 0x31b   :  { %s1145_s8 = smov (!%p333_p3, %s332_s8), %s1139_s30 }
 0x31f   :  { %v906_v27 = vpop.eup %905 }
 0x320   :  { %v385_v28 = vmul.f32 %v906_v27, %v383_v26 }
 0x322   :  { %v386_v29 = vmul.f32 %v906_v27, %v385_v28  ;;  %v461_v28 = vadd.f32 %v460_v23, %v459_v21 }
 0x324   :  { %v387_v30 = vmul.f32 0.5, %v386_v29 }
 0x326   :  { %v388_v31 = vsub.f32 1.5, %v387_v30 }
 0x328   :  { %v389_v32 = vmul.f32 %v906_v27, %v388_v31 }
 0x32a   :  { %v390_v33 = vmul.f32 %v389_v32, %v383_v26 }
 0x32c   :  { %v392_v35 = vsel %vm391_vm7, %v383_v26, %v390_v33  ;;  %v442_v26 = vadd.f32 %v441_v22, %v440_v20  ;;  %v614_v20 = vadd.f32 %v613_v18, %v612_v16 }
 0x32d   :  { %v395_v36 = vsel %vm393_vm8, %v394_v34, %v392_v35  ;;  %v462_v34 = vrot.slane %v461_v28, 1 }
 0x32e   :  { %796 = vpush %v395_v36  ;;  %v443_v32 = vrot.slane %v442_v26, 1  ;;  %v615_v22 = vrot.slane %v614_v20, 1 }
 0x32f   :  { %v463_v41 = vadd.f32 %v462_v34, %v461_v28 }
 0x330   :  { %v444_v40 = vadd.f32 %v443_v32, %v442_v26 }
 0x35f   :  { %s797_s0 = spop %796 }
 0x360   :  { %s397_s16 = smax.f32 %s923_s13, %s797_s0 }
 0x361   :  { %v398_v19 = vstv %s397_s16 }
 0x362   :  { %907 = vrcp.f32 %v398_v19  ;;  %v410_v29 = vand.u32 2147483648, %v398_v19  ;;  %v408_v31 = vand.u32 2147483647, %v398_v19  ;;  %vm404_vm12 = vweird.f32 %v398_v19 }
 0x364   :  { %v411_v35 = vor.u32 1.1754944e-38, %v410_v29  ;;  %vm409_vm14 = vcmp.eq.f32.partialorder %v408_v31, 8.507059e+37 }
 0x368   :  { %v908_v24 = vpop.eup %907 }
 0x369   :  { %v400_v25 = vmul.f32 %v908_v24, %v398_v19  ;;  %vm405_vm11 = vweird.f32 %v908_v24  ;;  %v595_v19 = vadd.f32 %v594_v17, %v593_v15 }
 0x36a   :  { %vm406_vm13 = vmor %vm404_vm12, %vm405_vm11 }
 0x36b   :  { %v401_v27 = vsub.f32 1.0, %v400_v25  ;;  %v596_v21 = vrot.slane %v595_v19, 1  ;;  %v520_v25 = vpop.xlane.xlu0 %519 }
 0x36c   :  { %v521_v29 = vrot.slane %v520_v25, 4 }
 0x36d   :  { %v402_v30 = vmul.f32 %v908_v24, %v401_v27  ;;  %v597_v23 = vadd.f32 %v596_v21, %v595_v19  ;;  %v539_v27 = vpop.xlane.xlu1 %538 }
 0x36e   :  { %v522_v32 = vadd.f32 %v521_v29, %v520_v25 }
 0x36f   :  { %v403_v33 = vadd.f32 %v908_v24, %v402_v30  ;;  %v598_v26 = vsel %vm27_vm2, %v597_v23, 0.0  ;;  %v540_v30 = vrot.slane %v539_v27, 4 }
 0x370   :  { %599 = vadd.xlane.f32.xlu2 %v598_v26  ;;  %v523_v34 = vrot.slane %v522_v32, 2 }
 0x371   :  { %v407_v36 = vsel %vm406_vm13, %v908_v24, %v403_v33  ;;  %v616_v24 = vadd.f32 %v615_v22, %v614_v20  ;;  %v541_v33 = vadd.f32 %v540_v30, %v539_v27 }
 0x372   :  { %v412_v38 = vsel %vm409_vm14, %v411_v35, %v407_v36 }
 0x373   :  { %798 = vpush %v412_v38  ;;  %v617_v28 = vsel %vm27_vm2, %v616_v24, 0.0  ;;  %v542_v35 = vrot.slane %v541_v33, 2 }
 0x374   :  { %816 = vpush %v444_v40  ;;  %618 = vadd.xlane.f32.xlu0 %v617_v28  ;;  %v524_v40 = vadd.f32 %v523_v34, %v522_v32 }
 0x375   :  { %818 = vpush %v463_v41 }
 0x3a4   :  { %s799_s17 = spop %798 }
 0x3a5   :  { %s414_s18 = smul.f32 %s799_s17, %s1026_s9  ;;  %s1056_s19 = spop %816 }
 0x3a6   :  { %s819_s20 = spop %818 }
 0x3a7   :  { %p415_p4 = scmp.gt.f32.partialorder %s414_s18, %s1145_s8  ;;  %v465_v42 = vstv %s819_s20 }
 0x3a8   :  { %909 = vrsqrt.f32 %v465_v42  ;;  %vm473_vm15 = vcmp.eq.f32.partialorder %v465_v42, inf  ;;  %v476_v50 = vand.u32 2147483648, %v465_v42  ;;  %vm475_vm0 = vcmp.eq.f32.partialorder %v465_v42, 0.0 }
 0x3a9   :  { %s1147_s28 = smov (%p415_p4, %s1141_s28), 0.125  ;;  %s1149_s4 = smov (%p415_p4, %s1143_s4), 8.0 }
 0x3aa   :  { %s1151_s18 = smov (!%p415_p4, %s414_s18), %s1145_s8 }
 0x3ae   :  { %v910_v43 = vpop.eup %909 }
 0x3af   :  { %v467_v44 = vmul.f32 %v910_v43, %v465_v42 }
 0x3b1   :  { %v468_v45 = vmul.f32 %v910_v43, %v467_v44 }
 0x3b3   :  { %v469_v46 = vmul.f32 0.5, %v468_v45 }
 0x3b5   :  { %v470_v47 = vsub.f32 1.5, %v469_v46  ;;  %v525_v46 = vrot.slane %v524_v40, 1 }
 0x3b7   :  { %v471_v48 = vmul.f32 %v910_v43, %v470_v47 }
 0x3b9   :  { %v472_v49 = vmul.f32 %v471_v48, %v465_v42 }
 0x3bb   :  { %v474_v51 = vsel %vm473_vm15, %v465_v42, %v472_v49  ;;  %v543_v42 = vadd.f32 %v542_v35, %v541_v33 }
 0x3bc   :  { %v477_v52 = vsel %vm475_vm0, %v476_v50, %v474_v51 }
 0x3bd   :  { %820 = vpush %v477_v52  ;;  %v544_v48 = vrot.slane %v543_v42, 1  ;;  %v526_v52 = vadd.f32 %v525_v46, %v524_v40 }
 0x3bf   :  { %v545_v53 = vadd.f32 %v544_v48, %v543_v42 }
 0x3e3   :  { %v600_v0 = vpop.xlane.xlu2 %599 }
 0x3e4   :  { %v601_v3 = vrot.slane %v600_v0, 4 }
 0x3e6   :  { %v602_v6 = vadd.f32 %v601_v3, %v600_v0 }
 0x3e7   :  { %v619_v1 = vpop.xlane.xlu0 %618 }
 0x3e8   :  { %v620_v4 = vrot.slane %v619_v1, 4  ;;  %v603_v8 = vrot.slane %v602_v6, 2 }
 0x3ea   :  { %v621_v7 = vadd.f32 %v620_v4, %v619_v1  ;;  %v604_v12 = vadd.f32 %v603_v8, %v602_v6 }
 0x3ec   :  { %v622_v9 = vrot.slane %v621_v7, 2  ;;  %v605_v18 = vrot.slane %v604_v12, 1 }
 0x3ee   :  { %s821_s21 = spop %820  ;;  %v623_v14 = vadd.f32 %v622_v9, %v621_v7  ;;  %v606_v24 = vadd.f32 %v605_v18, %v604_v12 }
 0x3ef   :  { %s479_s22 = smax.f32 %s923_s13, %s821_s21 }
 0x3f0   :  { %v480_v31 = vstv %s479_s22  ;;  %v624_v20 = vrot.slane %v623_v14, 1 }
 0x3f1   :  { %911 = vrcp.f32 %v480_v31  ;;  %v492_v43 = vand.u32 2147483648, %v480_v31  ;;  %v490_v45 = vand.u32 2147483647, %v480_v31  ;;  %vm486_vm4 = vweird.f32 %v480_v31 }
 0x3f2   :  { %v625_v25 = vadd.f32 %v624_v20, %v623_v14 }
 0x3f3   :  { %v493_v49 = vor.u32 1.1754944e-38, %v492_v43  ;;  %vm491_vm6 = vcmp.eq.f32.partialorder %v490_v45, 8.507059e+37 }
 0x3f7   :  { %v912_v36 = vpop.eup %911 }
 0x3f8   :  { %v482_v38 = vmul.f32 %v912_v36, %v480_v31  ;;  %vm487_vm2 = vweird.f32 %v912_v36 }
 0x3f9   :  { %vm488_vm5 = vmor %vm486_vm4, %vm487_vm2 }
 0x3fa   :  { %v483_v41 = vsub.f32 1.0, %v482_v38 }
 0x3fc   :  { %v484_v44 = vmul.f32 %v912_v36, %v483_v41 }
 0x3fe   :  { %v485_v47 = vadd.f32 %v912_v36, %v484_v44 }
 0x400   :  { %v489_v50 = vsel %vm488_vm5, %v912_v36, %v485_v47 }
 0x401   :  { %v494_v51 = vsel %vm491_vm6, %v493_v49, %v489_v50 }
 0x402   :  { %822 = vpush %v494_v51 }
 0x403   :  { %840 = vpush %v526_v52 }
 0x404   :  { %842 = vpush %v545_v53 }
 0x433   :  { %s823_s23 = spop %822 }
 0x434   :  { %s496_s24 = smul.f32 %s823_s23, %s1056_s19  ;;  %s1082_s25 = spop %840 }
 0x435   :  { %s843_s26 = spop %842 }
 0x436   :  { %p497_p5 = scmp.gt.f32.partialorder %s496_s24, %s1151_s18  ;;  %v547_v54 = vstv %s843_s26 }
 0x437   :  { %913 = vrsqrt.f32 %v547_v54  ;;  %vm555_vm7 = vcmp.eq.f32.partialorder %v547_v54, inf  ;;  %v558_v62 = vand.u32 2147483648, %v547_v54  ;;  %vm557_vm8 = vcmp.eq.f32.partialorder %v547_v54, 0.0 }
 0x438   :  { %s1153_s28 = smov (%p497_p5, %s1147_s28), 0.25  ;;  %s1155_s4 = smov (%p497_p5, %s1149_s4), 4.0 }
 0x439   :  { %s1157_s24 = smov (!%p497_p5, %s496_s24), %s1151_s18 }
 0x43d   :  { %v914_v55 = vpop.eup %913 }
 0x43e   :  { %v549_v56 = vmul.f32 %v914_v55, %v547_v54 }
 0x440   :  { %v550_v57 = vmul.f32 %v914_v55, %v549_v56 }
 0x442   :  { %v551_v58 = vmul.f32 0.5, %v550_v57 }
 0x444   :  { %v552_v59 = vsub.f32 1.5, %v551_v58 }
 0x446   :  { %v553_v60 = vmul.f32 %v914_v55, %v552_v59 }
 0x448   :  { %v554_v61 = vmul.f32 %v553_v60, %v547_v54 }
 0x44a   :  { %v556_v63 = vsel %vm555_vm7, %v547_v54, %v554_v61 }
 0x44b   :  { %v559_v2 = vsel %vm557_vm8, %v558_v62, %v556_v63 }
 0x44c   :  { %844 = vpush %v559_v2 }
 0x47d   :  { %s845_s27 = spop %844 }
 0x47e   :  { %s561_s29 = smax.f32 %s923_s13, %s845_s27 }
 0x47f   :  { %v562_v5 = vstv %s561_s29 }
 0x480   :  { %915 = vrcp.f32 %v562_v5  ;;  %v574_v15 = vand.u32 2147483648, %v562_v5  ;;  %v572_v17 = vand.u32 2147483647, %v562_v5  ;;  %vm568_vm10 = vweird.f32 %v562_v5 }
 0x482   :  { %v575_v21 = vor.u32 1.1754944e-38, %v574_v15  ;;  %vm573_vm12 = vcmp.eq.f32.partialorder %v572_v17, 8.507059e+37 }
 0x486   :  { %v916_v10 = vpop.eup %915 }
 0x487   :  { %v564_v11 = vmul.f32 %v916_v10, %v562_v5  ;;  %vm569_vm9 = vweird.f32 %v916_v10 }
 0x488   :  { %vm570_vm11 = vmor %vm568_vm10, %vm569_vm9 }
 0x489   :  { %v565_v13 = vsub.f32 1.0, %v564_v11 }
 0x48b   :  { %v566_v16 = vmul.f32 %v916_v10, %v565_v13 }
 0x48d   :  { %v567_v19 = vadd.f32 %v916_v10, %v566_v16 }
 0x48f   :  { %v571_v22 = vsel %vm570_vm11, %v916_v10, %v567_v19 }
 0x490   :  { %v576_v23 = vsel %vm573_vm12, %v575_v21, %v571_v22 }
 0x491   :  { %846 = vpush %v576_v23 }
 0x492   :  { %864 = vpush %v606_v24 }
 0x493   :  { %866 = vpush %v625_v25 }
 0x4c2   :  { %s847_s30 = spop %846 }
 0x4c3   :  { %s578_s2 = smul.f32 %s847_s30, %s1082_s25  ;;  %s1096_s3 = spop %864 }
 0x4c4   :  { %s867_s5 = spop %866 }
 0x4c5   :  { %p579_p6 = scmp.gt.f32.partialorder %s578_s2, %s1157_s24  ;;  %v627_v26 = vstv %s867_s5 }
 0x4c6   :  { %917 = vrsqrt.f32 %v627_v26  ;;  %vm635_vm13 = vcmp.eq.f32.partialorder %v627_v26, inf  ;;  %v638_v34 = vand.u32 2147483648, %v627_v26  ;;  %vm637_vm14 = vcmp.eq.f32.partialorder %v627_v26, 0.0 }
 0x4c7   :  { %s1159_s2 = smov (!%p579_p6, %s578_s2), %s1157_s24  ;;  %s1161_s28 = smov (%p579_p6, %s1153_s28), 0.5 }
 0x4c8   :  { %s1163_s4 = smov (%p579_p6, %s1155_s4), 2.0 }
 0x4cc   :  { %v918_v27 = vpop.eup %917 }
 0x4cd   :  { %v629_v28 = vmul.f32 %v918_v27, %v627_v26 }
 0x4cf   :  { %v630_v29 = vmul.f32 %v918_v27, %v629_v28 }
 0x4d1   :  { %v631_v30 = vmul.f32 0.5, %v630_v29 }
 0x4d3   :  { %v632_v31 = vsub.f32 1.5, %v631_v30 }
 0x4d5   :  { %v633_v32 = vmul.f32 %v918_v27, %v632_v31 }
 0x4d7   :  { %v634_v33 = vmul.f32 %v633_v32, %v627_v26 }
 0x4d9   :  { %v636_v35 = vsel %vm635_vm13, %v627_v26, %v634_v33 }
 0x4da   :  { %v639_v36 = vsel %vm637_vm14, %v638_v34, %v636_v35 }
 0x4db   :  { %868 = vpush %v639_v36 }
 0x50c   :  { %s869_s6 = spop %868 }
 0x50d   :  { %s641_s7 = smax.f32 %s923_s13, %s869_s6 }
 0x50e   :  { %v642_v38 = vstv %s641_s7 }
 0x50f   :  { %919 = vrcp.f32 %v642_v38  ;;  %v654_v43 = vand.u32 2147483648, %v642_v38  ;;  %v652_v45 = vand.u32 2147483647, %v642_v38  ;;  %vm648_vm0 = vweird.f32 %v642_v38 }
 0x511   :  { %v655_v47 = vor.u32 1.1754944e-38, %v654_v43  ;;  %vm653_vm3 = vcmp.eq.f32.partialorder %v652_v45, 8.507059e+37 }
 0x515   :  { %v920_v40 = vpop.eup %919 }
 0x516   :  { %v644_v41 = vmul.f32 %v920_v40, %v642_v38  ;;  %vm649_vm15 = vweird.f32 %v920_v40 }
 0x517   :  { %vm650_vm1 = vmor %vm648_vm0, %vm649_vm15 }
 0x518   :  { %v645_v42 = vsub.f32 1.0, %v644_v41 }
 0x51a   :  { %v646_v44 = vmul.f32 %v920_v40, %v645_v42 }
 0x51c   :  { %v647_v46 = vadd.f32 %v920_v40, %v646_v44 }
 0x51e   :  { %v651_v48 = vsel %vm650_vm1, %v920_v40, %v647_v46 }
 0x51f   :  { %v656_v49 = vsel %vm653_vm3, %v655_v47, %v651_v48 }
 0x520   :  { %870 = vpush %v656_v49 }
 0x551   :  { %s871_s13 = spop %870 }
 0x552   :  { %s658_s8 = smul.f32 %s871_s13, %s1096_s3 }
 0x554   :  { %p1111_p7 = scmp.gt.f32.partialorder %s658_s8, %s1159_s2 }
 0x556   :  { %s1165_s28 = smov (%p1111_p7, %s1161_s28), 1.0  ;;  %s1167_s4 = smov (%p1111_p7, %s1163_s4), 1.0 }
 0x557   :  { %v662_v50 = vstv %s1167_s4  ;;  %v671_v5 = vstv %s1165_s28 }
 0x558   :  { %v663_v51 = vmul.f32 %v1041_v37, %v662_v50  ;;  %v664_v52 = vmul.f32 %v1047_v39, %v662_v50 }
 0x55a   :  { %v874_v53 = vcvt.f32.s32 %v663_v51  ;;  %v882_v54 = vcvt.f32.s32 %v664_v52  ;;  %v872_v56 = vand.u32 2147483647, %v663_v51  ;;  %v877_v59 = vand.u32 2147483648, %v663_v51 }
 0x55b   :  { %v880_v60 = vand.u32 2147483647, %v664_v52  ;;  %v885_v62 = vand.u32 2147483648, %v664_v52 }
 0x55c   :  { %v875_v55 = vcvt.s32.f32 %v874_v53  ;;  %v883_v57 = vcvt.s32.f32 %v882_v54  ;;  %vm873_vm2 = vcmp.lt.f32.partialorder %v872_v56, 8388608.0 }
 0x55d   :  { %vm881_vm4 = vcmp.lt.f32.partialorder %v880_v60, 8388608.0 }
 0x55e   :  { %v876_v58 = vand.u32 2147483647, %v875_v55  ;;  %v884_v61 = vand.u32 2147483647, %v883_v57 }
 0x560   :  { %v878_v63 = vor.u32 %v877_v59, %v876_v58  ;;  %v886_v2 = vor.u32 %v885_v62, %v884_v61 }
 0x562   :  { %v879_v0 = vsel %vm873_vm2, %v878_v63, %v663_v51  ;;  %v887_v1 = vsel %vm881_vm4, %v886_v2, %v664_v52 }
 0x563   :  { %v667_v3 = vmax.f32 %v879_v0, -128.0  ;;  %v668_v37 = vmax.f32 %v887_v1, -128.0 }
 0x565   :  { %v669_v4 = vmin.f32 %v667_v3, 127.0  ;;  %v670_v39 = vmin.f32 %v668_v37, 127.0 }
 0x567   :  { %v672_v6 = vmul.f32 %v671_v5, %v669_v4  ;;  %v673_v7 = vmul.f32 %v671_v5, %v670_v39 }
 0x569   :  { %674 = vst [vmem:[%s1130_s1] sm:$0xff] %v672_v6 }
 0x56a   :  { %675 = vst [vmem:[%s1130_s1 + $0x8] sm:$0xff] %v673_v7 }

</bundles_post_ra>
